<compile_context>
chip_gen: v6e
topology: v6e:2x2x1
jax: 0.10.0
libtpu: 0.0.40
codegen_flags: <defaults>
</compile_context>

<pallas_src>
import functools

import jax
import jax.numpy as jnp
from jax import lax
from jax.experimental import pallas as pl
from jax.experimental.pallas import tpu as pltpu

_F32 = jnp.float32
_NT = (((1,), (1,)), ((), ()))        # contract last dims: (m,k) x (n,k) -> (m,n)
_HI = lax.Precision.HIGHEST
_FUSED_MAX_R = 512                    # above this, use the tiled 2-D-grid Gram path
_VMEM_LIMIT = 48 * 1024 * 1024


# ----------------------------------------------------------------------------
# Shared per-row alignment math (planar (rows, P) layout, pure jnp on values)
# ----------------------------------------------------------------------------
def _align_rotate(x, y, z):
    """Center each row and rotate it so its last particle lies on the +x axis.

    x, y, z: (rows, P) float32 coordinates (one row per replica).
    Returns rotated (xr, yr, zr), each (rows, P).
    """
    rows, p = x.shape
    inv_p = 1.0 / float(p)

    # ---- center (a constant `offset` shift cancels exactly here) -----------
    xc = x - jnp.sum(x, axis=1, keepdims=True) * inv_p
    yc = y - jnp.sum(y, axis=1, keepdims=True) * inv_p
    zc = z - jnp.sum(z, axis=1, keepdims=True) * inv_p

    # ---- last (centered) particle -> unit vector A --------------------------
    lane = lax.broadcasted_iota(jnp.int32, (1, p), 1)
    last = (lane == (p - 1)).astype(_F32)
    tx = jnp.sum(xc * last, axis=1, keepdims=True)          # (rows, 1)
    ty = jnp.sum(yc * last, axis=1, keepdims=True)
    tz = jnp.sum(zc * last, axis=1, keepdims=True)
    tn2 = tx * tx + ty * ty + tz * tz
    inv_tn = lax.rsqrt(jnp.maximum(tn2, 1e-30))
    ax, ay, az = tx * inv_tn, ty * inv_tn, tz * inv_tn

    dot = ax                                                # A . [1, 0, 0]
    cn2 = ay * ay + az * az
    cn = jnp.sqrt(cn2)                                      # ||cross(A, B)||
    inv_cn2 = 1.0 / jnp.maximum(cn2, 1e-30)

    # v = normalize(B - (A.B) A);  w = cross(B, A) = (0, -Az, Ay)
    v0 = 1.0 - dot * ax
    v1 = -dot * ay
    v2 = -dot * az
    inv_vn = lax.rsqrt(jnp.maximum(v0 * v0 + v1 * v1 + v2 * v2, 1e-30))
    u = (ax, ay, az)
    v = (v0 * inv_vn, v1 * inv_vn, v2 * inv_vn)
    w = (jnp.zeros_like(ax), -az, ay)

    # U = F_inv @ G @ F in closed form (F_inv columns [u, v, w] are orthogonal,
    # |u|=|v|=1, |w|=cn, so F = rows [u, v, w/cn^2]).  Identity fallback for
    # degenerate rows (torch.inverse would fail there).
    ok = (tn2 > 1e-24) & (cn2 > 1e-12)

    def U(r, c):
        val = (dot * (u[r] * u[c] + v[r] * v[c])
               + cn * (u[r] * v[c] - v[r] * u[c])
               + w[r] * w[c] * inv_cn2)
        return jnp.where(ok, val, 1.0 if r == c else 0.0)

    # rotated = centered @ U -> per-component broadcast FMAs; each U(r,c) is
    # consumed immediately so only a handful of (rows,1) scalars stay live.
    xr = xc * U(0, 0) + yc * U(1, 0) + zc * U(2, 0)
    yr = xc * U(0, 1) + yc * U(1, 1) + zc * U(2, 1)
    zr = xc * U(0, 2) + yc * U(1, 2) + zc * U(2, 2)
    return xr, yr, zr


def _gram3(ax_, ay_, az_, bx_, by_, bz_):
    """sum_c  A_c @ B_c^T  with full f32 precision on the MXU."""
    return (lax.dot_general(ax_, bx_, _NT, precision=_HI, preferred_element_type=_F32)
            + lax.dot_general(ay_, by_, _NT, precision=_HI, preferred_element_type=_F32)
            + lax.dot_general(az_, bz_, _NT, precision=_HI, preferred_element_type=_F32))


# ----------------------------------------------------------------------------
# Path 1 (small/medium R): single fused kernel -> (R, R) RBF kernel matrix
# ----------------------------------------------------------------------------
def _vendi_fused_kernel(x_ref, y_ref, z_ref, k_ref, *, gamma):
    xr, yr, zr = _align_rotate(x_ref[...], y_ref[...], z_ref[...])
    inner = _gram3(xr, yr, zr, xr, yr, zr)                  # (R, R)
    r = inner.shape[0]
    ri = lax.broadcasted_iota(jnp.int32, (r, r), 0)
    ci = lax.broadcasted_iota(jnp.int32, (r, r), 1)
    eye = ri == ci
    diag = jnp.where(eye, inner, 0.0)
    sq_col = jnp.sum(diag, axis=1, keepdims=True)           # (R, 1)
    sq_row = jnp.sum(diag, axis=0, keepdims=True)           # (1, R)
    d2 = jnp.maximum(sq_col + sq_row - 2.0 * inner, 0.0)
    k_ref[...] = jnp.where(eye, 1.0, jnp.exp(-gamma * d2))  # exact 1.0 diagonal


def _kernel_matrix_fused(x, y, z, gamma):
    r, p = x.shape
    return pl.pallas_call(
        functools.partial(_vendi_fused_kernel, gamma=float(gamma)),
        out_shape=jax.ShapeDtypeStruct((r, r), _F32),
        grid=(1,),
        in_specs=[pl.BlockSpec((r, p), lambda i: (0, 0))] * 3,
        out_specs=pl.BlockSpec((r, r), lambda i: (0, 0)),
        compiler_params=pltpu.CompilerParams(
            dimension_semantics=("arbitrary",),
            vmem_limit_bytes=_VMEM_LIMIT),
    )(x, y, z)


# ----------------------------------------------------------------------------
# Path 2 (large R): alignment kernel (1-D parallel grid) + tiled Gram kernel
# (2-D parallel output grid -> pipelined, megacore/2-TC shardable)
# ----------------------------------------------------------------------------
def _align_kernel(x_ref, y_ref, z_ref, xr_ref, yr_ref, zr_ref, sq_ref):
    xr, yr, zr = _align_rotate(x_ref[...], y_ref[...], z_ref[...])
    xr_ref[...] = xr
    yr_ref[...] = yr
    zr_ref[...] = zr
    sq_ref[...] = jnp.sum(xr * xr + yr * yr + zr * zr, axis=1, keepdims=True)


def _gram_tile_kernel(xi_ref, yi_ref, zi_ref, xj_ref, yj_ref, zj_ref,
                      sqc_ref, sqr_ref, k_ref, *, gamma, tm, tn):
    inner = _gram3(xi_ref[...], yi_ref[...], zi_ref[...],
                   xj_ref[...], yj_ref[...], zj_ref[...])   # (tm, tn)
    d2 = jnp.maximum(sqc_ref[...] + sqr_ref[...] - 2.0 * inner, 0.0)
    rows = pl.program_id(0) * tm + lax.broadcasted_iota(jnp.int32, (tm, tn), 0)
    cols = pl.program_id(1) * tn + lax.broadcasted_iota(jnp.int32, (tm, tn), 1)
    eye = rows == cols
    k_ref[...] = jnp.where(eye, 1.0, jnp.exp(-gamma * d2))


def _kernel_matrix_tiled(x, y, z, gamma, tile):
    r, p = x.shape
    assert tile % 128 == 0, "Gram tile must be a multiple of 128"
    rp = ((r + tile - 1) // tile) * tile
    if rp != r:                                             # pad rows; sliced off below
        pad = ((0, rp - r), (0, 0))
        x, y, z = jnp.pad(x, pad), jnp.pad(y, pad), jnp.pad(z, pad)

    # Stage 1: per-row alignment (rows are independent -> parallel row blocks).
    xr, yr, zr, sq = pl.pallas_call(
        _align_kernel,
        out_shape=(jax.ShapeDtypeStruct((rp, p), _F32),) * 3
                  + (jax.ShapeDtypeStruct((rp, 1), _F32),),
        grid=(rp // tile,),
        in_specs=[pl.BlockSpec((tile, p), lambda i: (i, 0))] * 3,
        out_specs=(pl.BlockSpec((tile, p), lambda i: (i, 0)),) * 3
                  + (pl.BlockSpec((tile, 1), lambda i: (i, 0)),),
        compiler_params=pltpu.CompilerParams(
            dimension_semantics=("parallel",),
            vmem_limit_bytes=_VMEM_LIMIT),
    )(x, y, z)
    sq_row = sq.reshape(1, rp)                              # tiny wrapper-side relayout

    # Stage 2: Gram / exp on a 2-D parallel output grid.
    k = pl.pallas_call(
        functools.partial(_gram_tile_kernel, gamma=float(gamma), tm=tile, tn=tile),
        out_shape=jax.ShapeDtypeStruct((rp, rp), _F32),
        grid=(rp // tile, rp // tile),
        in_specs=[pl.BlockSpec((tile, p), lambda i, j: (i, 0))] * 3
                 + [pl.BlockSpec((tile, p), lambda i, j: (j, 0))] * 3
                 + [pl.BlockSpec((tile, 1), lambda i, j: (i, 0)),
                    pl.BlockSpec((1, tile), lambda i, j: (0, j))],
        out_specs=pl.BlockSpec((tile, tile), lambda i, j: (i, j)),
        compiler_params=pltpu.CompilerParams(
            dimension_semantics=("parallel", "parallel"),
            vmem_limit_bytes=_VMEM_LIMIT),
    )(xr, yr, zr, xr, yr, zr, sq, sq_row)
    return k[:r, :r]


def vendi_kernel_matrix(x, y, z, *, gamma, gram_tile=None):
    """(R, R) kernel K[i,j] = exp(-gamma * ||rot_i - rot_j||^2), K[i,i] = 1."""
    r, _ = x.shape
    x, y, z = x.astype(_F32), y.astype(_F32), z.astype(_F32)
    if gram_tile is None:
        if r <= _FUSED_MAX_R:
            return _kernel_matrix_fused(x, y, z, gamma)
        gram_tile = 256
    return _kernel_matrix_tiled(x, y, z, gamma, gram_tile)


# ----------------------------------------------------------------------------
# JAX glue: eigendecomposition + Vendi (Renyi) entropy
# ----------------------------------------------------------------------------
# TODO(synk): torch.linalg.eigh has no Pallas equivalent; computed with
# jnp.linalg.eigh here.
def vendi_entropy(k_mat, q):
    r = k_mat.shape[0]
    w = jnp.linalg.eigh(k_mat / r)[0]
    pos = w > 0
    w_safe = jnp.where(pos, w, 1.0)
    if q == 1:
        return -jnp.sum(jnp.where(pos, w * jnp.log(w_safe), 0.0))
    elif q == -1:
        return -jnp.log(jnp.max(jnp.where(pos, w, -jnp.inf)))
    else:
        return jnp.log(jnp.sum(jnp.where(pos, w_safe ** q, 0.0))) / (1.0 - q)


def _vendi_forward(positions, *, n_replicas, n_particles, nu, gamma, q, gram_tile):
    pos = jnp.asarray(positions, _F32).reshape(n_replicas, n_particles, 3)
    # Planar split is wrapper-side layout plumbing only: it keeps the kernel
    # free of lane rolls / selection matmuls for the per-particle xyz broadcast.
    x, y, z = pos[..., 0], pos[..., 1], pos[..., 2]
    k = vendi_kernel_matrix(x, y, z, gamma=gamma, gram_tile=gram_tile)
    return -nu * vendi_entropy(k, q)


class VendiModule:
    """JAX/Pallas port of the torch VendiModule (no learnable parameters)."""

    def __init__(self, n_replicas, n_particles, device=None, nu=1.0,
                 stop=1000, gamma=1.0, offset=0.0, q=1.0, gram_tile=None):
        self.n_replicas = n_replicas
        self.n_particles = n_particles
        self.device = device
        self.nu = float(nu)
        self.stop = float(stop)
        self.gamma = float(gamma)
        # `offset` kept for API parity; a constant shift cancels exactly under
        # the per-replica centering, so it never changes the forward output.
        self.offset = float(offset)
        self.q = q
        self.current_step = 0.0
        self._forward = jax.jit(functools.partial(
            _vendi_forward, n_replicas=n_replicas, n_particles=n_particles,
            nu=self.nu, gamma=self.gamma, q=self.q, gram_tile=gram_tile))

    def __call__(self, positions):
        positions = jnp.asarray(positions, _F32).reshape(self.n_replicas, -1, 3)
        self.current_step += 1.0
        if self.stop < self.current_step:
            return jnp.sum(positions * 0.0)
        return self._forward(positions)


if __name__ == "__main__":
    # NOTE: at R << 128 the (R,R) store is a partial vst and the call is
    # overhead/eigh-bound; batching frames per call is the lever there.
    key = jax.random.PRNGKey(0)
    k1, k2 = jax.random.split(key)

    # Small demo shapes through the fused path + full forward (entropy).
    R, P = 8, 16
    positions = jax.random.normal(k1, (R, P, 3), dtype=jnp.float32)
    mod = VendiModule(R, P, nu=1.0, stop=1000, gamma=1.0, offset=0.0, q=1.0)
    out = mod(positions)
    jax.block_until_ready(out)

    # Exercise the large-R tiled path (2-D parallel Gram grid) and check it
    # against the fused single-call path on the same inputs.
    R2, P2 = 256, 16
    pos2 = jax.random.normal(k2, (R2, P2, 3), dtype=jnp.float32)
    x2, y2, z2 = pos2[..., 0], pos2[..., 1], pos2[..., 2]
    k_fused = vendi_kernel_matrix(x2, y2, z2, gamma=1.0)
    k_tiled = vendi_kernel_matrix(x2, y2, z2, gamma=1.0, gram_tile=128)
    jax.block_until_ready((k_fused, k_tiled))

    assert bool(jnp.isfinite(out)), "non-finite Vendi loss"
    assert float(jnp.max(jnp.abs(k_fused - k_tiled))) < 5e-4, "fused/tiled mismatch"
    print("KERNEL_OK")
</pallas_src>

<mosaic_0001>
module attributes {stable_mosaic.version = 11 : i64} {
  func.func @_vendi_fused_kernel(%arg0: i32, %arg1: memref<8x16xf32, #tpu.memory_space<vmem>>, %arg2: memref<8x16xf32, #tpu.memory_space<vmem>>, %arg3: memref<8x16xf32, #tpu.memory_space<vmem>>, %arg4: memref<8x8xf32, #tpu.memory_space<vmem>>) attributes {dimension_semantics = [#tpu.dimension_semantics<arbitrary>], iteration_bounds = array<i64: 1>, scalar_prefetch = 0 : i64, scratch_operands = 0 : i64, tpu.core_type = #tpu.core_type<tc>, window_params = [{pipeline_mode = #tpu.pipeline_mode<synchronous>, transform_indices = @transform_0, window_bounds = array<i64: 8, 16>}, {pipeline_mode = #tpu.pipeline_mode<synchronous>, transform_indices = @transform_1, window_bounds = array<i64: 8, 16>}, {pipeline_mode = #tpu.pipeline_mode<synchronous>, transform_indices = @transform_2, window_bounds = array<i64: 8, 16>}, {pipeline_mode = #tpu.pipeline_mode<synchronous>, transform_indices = @transform_3, window_bounds = array<i64: 8, 8>}]} {
    %c0 = arith.constant 0 : index
    %c0_0 = arith.constant 0 : index
    %0 = vector.load %arg1[%c0, %c0_0] : memref<8x16xf32, #tpu.memory_space<vmem>>, vector<8x16xf32>
    %c0_1 = arith.constant 0 : index
    %c0_2 = arith.constant 0 : index
    %1 = vector.load %arg2[%c0_1, %c0_2] : memref<8x16xf32, #tpu.memory_space<vmem>>, vector<8x16xf32>
    %c0_3 = arith.constant 0 : index
    %c0_4 = arith.constant 0 : index
    %2 = vector.load %arg3[%c0_3, %c0_4] : memref<8x16xf32, #tpu.memory_space<vmem>>, vector<8x16xf32>
    %cst = arith.constant dense<0.000000e+00> : vector<8xf32>
    %3 = vector.multi_reduction <add>, %0, %cst [1] : vector<8x16xf32> to vector<8xf32>
    %4 = vector.shape_cast %3 : vector<8xf32> to vector<8x1xf32>
    %cst_5 = arith.constant 6.250000e-02 : f32
    %5 = vector.broadcast %cst_5 : f32 to vector<8x1xf32>
    %6 = arith.mulf %4, %5 : vector<8x1xf32>
    %7 = vector.broadcast %6 : vector<8x1xf32> to vector<8x16xf32>
    %8 = arith.subf %0, %7 : vector<8x16xf32>
    %cst_6 = arith.constant dense<0.000000e+00> : vector<8xf32>
    %9 = vector.multi_reduction <add>, %1, %cst_6 [1] : vector<8x16xf32> to vector<8xf32>
    %10 = vector.shape_cast %9 : vector<8xf32> to vector<8x1xf32>
    %cst_7 = arith.constant 6.250000e-02 : f32
    %11 = vector.broadcast %cst_7 : f32 to vector<8x1xf32>
    %12 = arith.mulf %10, %11 : vector<8x1xf32>
    %13 = vector.broadcast %12 : vector<8x1xf32> to vector<8x16xf32>
    %14 = arith.subf %1, %13 : vector<8x16xf32>
    %cst_8 = arith.constant dense<0.000000e+00> : vector<8xf32>
    %15 = vector.multi_reduction <add>, %2, %cst_8 [1] : vector<8x16xf32> to vector<8xf32>
    %16 = vector.shape_cast %15 : vector<8xf32> to vector<8x1xf32>
    %cst_9 = arith.constant 6.250000e-02 : f32
    %17 = vector.broadcast %cst_9 : f32 to vector<8x1xf32>
    %18 = arith.mulf %16, %17 : vector<8x1xf32>
    %19 = vector.broadcast %18 : vector<8x1xf32> to vector<8x16xf32>
    %20 = arith.subf %2, %19 : vector<8x16xf32>
    %21 = tpu.iota {dimensions = array<i32: 1>} : vector<1x16xi32>
    %c15_i32 = arith.constant 15 : i32
    %22 = vector.broadcast %c15_i32 : i32 to vector<1x16xi32>
    %23 = arith.cmpi eq, %21, %22 : vector<1x16xi32>
    %24 = arith.extui %23 : vector<1x16xi1> to vector<1x16xi32>
    %25 = arith.sitofp %24 : vector<1x16xi32> to vector<1x16xf32>
    %26 = vector.broadcast %25 : vector<1x16xf32> to vector<8x16xf32>
    %27 = arith.mulf %8, %26 : vector<8x16xf32>
    %cst_10 = arith.constant dense<0.000000e+00> : vector<8xf32>
    %28 = vector.multi_reduction <add>, %27, %cst_10 [1] : vector<8x16xf32> to vector<8xf32>
    %29 = vector.shape_cast %28 : vector<8xf32> to vector<8x1xf32>
    %30 = vector.broadcast %25 : vector<1x16xf32> to vector<8x16xf32>
    %31 = arith.mulf %14, %30 : vector<8x16xf32>
    %cst_11 = arith.constant dense<0.000000e+00> : vector<8xf32>
    %32 = vector.multi_reduction <add>, %31, %cst_11 [1] : vector<8x16xf32> to vector<8xf32>
    %33 = vector.shape_cast %32 : vector<8xf32> to vector<8x1xf32>
    %34 = vector.broadcast %25 : vector<1x16xf32> to vector<8x16xf32>
    %35 = arith.mulf %20, %34 : vector<8x16xf32>
    %cst_12 = arith.constant dense<0.000000e+00> : vector<8xf32>
    %36 = vector.multi_reduction <add>, %35, %cst_12 [1] : vector<8x16xf32> to vector<8xf32>
    %37 = vector.shape_cast %36 : vector<8xf32> to vector<8x1xf32>
    %38 = arith.mulf %29, %29 : vector<8x1xf32>
    %39 = arith.mulf %33, %33 : vector<8x1xf32>
    %40 = arith.addf %38, %39 : vector<8x1xf32>
    %41 = arith.mulf %37, %37 : vector<8x1xf32>
    %42 = arith.addf %40, %41 : vector<8x1xf32>
    %cst_13 = arith.constant 1.000000e-30 : f32
    %43 = vector.broadcast %cst_13 : f32 to vector<8x1xf32>
    %44 = arith.maximumf %42, %43 : vector<8x1xf32>
    %45 = math.rsqrt %44 : vector<8x1xf32>
    %46 = arith.mulf %29, %45 : vector<8x1xf32>
    %47 = arith.mulf %33, %45 : vector<8x1xf32>
    %48 = arith.mulf %37, %45 : vector<8x1xf32>
    %49 = arith.mulf %47, %47 : vector<8x1xf32>
    %50 = arith.mulf %48, %48 : vector<8x1xf32>
    %51 = arith.addf %49, %50 : vector<8x1xf32>
    %52 = math.sqrt %51 : vector<8x1xf32>
    %cst_14 = arith.constant 1.000000e-30 : f32
    %53 = vector.broadcast %cst_14 : f32 to vector<8x1xf32>
    %54 = arith.maximumf %51, %53 : vector<8x1xf32>
    %cst_15 = arith.constant 1.000000e+00 : f32
    %55 = vector.broadcast %cst_15 : f32 to vector<8x1xf32>
    %56 = arith.divf %55, %54 : vector<8x1xf32>
    %57 = arith.mulf %46, %46 : vector<8x1xf32>
    %cst_16 = arith.constant 1.000000e+00 : f32
    %58 = vector.broadcast %cst_16 : f32 to vector<8x1xf32>
    %59 = arith.subf %58, %57 : vector<8x1xf32>
    %cst_17 = arith.constant 0.000000e+00 : f32
    %60 = vector.broadcast %cst_17 : f32 to vector<8x1xf32>
    %61 = arith.subf %60, %46 : vector<8x1xf32>
    %62 = arith.mulf %61, %47 : vector<8x1xf32>
    %cst_18 = arith.constant 0.000000e+00 : f32
    %63 = vector.broadcast %cst_18 : f32 to vector<8x1xf32>
    %64 = arith.subf %63, %46 : vector<8x1xf32>
    %65 = arith.mulf %64, %48 : vector<8x1xf32>
    %66 = arith.mulf %59, %59 : vector<8x1xf32>
    %67 = arith.mulf %62, %62 : vector<8x1xf32>
    %68 = arith.addf %66, %67 : vector<8x1xf32>
    %69 = arith.mulf %65, %65 : vector<8x1xf32>
    %70 = arith.addf %68, %69 : vector<8x1xf32>
    %cst_19 = arith.constant 1.000000e-30 : f32
    %71 = vector.broadcast %cst_19 : f32 to vector<8x1xf32>
    %72 = arith.maximumf %70, %71 : vector<8x1xf32>
    %73 = math.rsqrt %72 : vector<8x1xf32>
    %74 = arith.mulf %59, %73 : vector<8x1xf32>
    %75 = arith.mulf %62, %73 : vector<8x1xf32>
    %76 = arith.mulf %65, %73 : vector<8x1xf32>
    %cst_20 = arith.constant 0.000000e+00 : f32
    %77 = vector.broadcast %cst_20 : f32 to vector<8x1xf32>
    %cst_21 = arith.constant 0.000000e+00 : f32
    %78 = vector.broadcast %cst_21 : f32 to vector<8x1xf32>
    %79 = arith.subf %78, %48 : vector<8x1xf32>
    %cst_22 = arith.constant 1.000000e-24 : f32
    %80 = vector.broadcast %cst_22 : f32 to vector<8x1xf32>
    %81 = arith.cmpf ogt, %42, %80 : vector<8x1xf32>
    %cst_23 = arith.constant 9.99999996E-13 : f32
    %82 = vector.broadcast %cst_23 : f32 to vector<8x1xf32>
    %83 = arith.cmpf ogt, %51, %82 : vector<8x1xf32>
    %84 = arith.andi %81, %83 : vector<8x1xi1>
    %85 = arith.mulf %46, %46 : vector<8x1xf32>
    %86 = arith.mulf %74, %74 : vector<8x1xf32>
    %87 = arith.addf %85, %86 : vector<8x1xf32>
    %88 = arith.mulf %46, %87 : vector<8x1xf32>
    %89 = arith.mulf %46, %74 : vector<8x1xf32>
    %90 = arith.mulf %74, %46 : vector<8x1xf32>
    %91 = arith.subf %89, %90 : vector<8x1xf32>
    %92 = arith.mulf %52, %91 : vector<8x1xf32>
    %93 = arith.addf %88, %92 : vector<8x1xf32>
    %94 = arith.mulf %77, %77 : vector<8x1xf32>
    %95 = arith.mulf %94, %56 : vector<8x1xf32>
    %96 = arith.addf %93, %95 : vector<8x1xf32>
    %cst_24 = arith.constant 1.000000e+00 : f32
    %97 = vector.broadcast %cst_24 : f32 to vector<8x1xf32>
    %98 = arith.select %84, %96, %97 : vector<8x1xi1>, vector<8x1xf32>
    %99 = vector.broadcast %98 : vector<8x1xf32> to vector<8x16xf32>
    %100 = arith.mulf %8, %99 : vector<8x16xf32>
    %101 = arith.mulf %47, %46 : vector<8x1xf32>
    %102 = arith.mulf %75, %74 : vector<8x1xf32>
    %103 = arith.addf %101, %102 : vector<8x1xf32>
    %104 = arith.mulf %46, %103 : vector<8x1xf32>
    %105 = arith.mulf %47, %74 : vector<8x1xf32>
    %106 = arith.mulf %75, %46 : vector<8x1xf32>
    %107 = arith.subf %105, %106 : vector<8x1xf32>
    %108 = arith.mulf %52, %107 : vector<8x1xf32>
    %109 = arith.addf %104, %108 : vector<8x1xf32>
    %110 = arith.mulf %79, %77 : vector<8x1xf32>
    %111 = arith.mulf %110, %56 : vector<8x1xf32>
    %112 = arith.addf %109, %111 : vector<8x1xf32>
    %cst_25 = arith.constant 0.000000e+00 : f32
    %113 = vector.broadcast %cst_25 : f32 to vector<8x1xf32>
    %114 = arith.select %84, %112, %113 : vector<8x1xi1>, vector<8x1xf32>
    %115 = vector.broadcast %114 : vector<8x1xf32> to vector<8x16xf32>
    %116 = arith.mulf %14, %115 : vector<8x16xf32>
    %117 = arith.addf %100, %116 : vector<8x16xf32>
    %118 = arith.mulf %48, %46 : vector<8x1xf32>
    %119 = arith.mulf %76, %74 : vector<8x1xf32>
    %120 = arith.addf %118, %119 : vector<8x1xf32>
    %121 = arith.mulf %46, %120 : vector<8x1xf32>
    %122 = arith.mulf %48, %74 : vector<8x1xf32>
    %123 = arith.mulf %76, %46 : vector<8x1xf32>
    %124 = arith.subf %122, %123 : vector<8x1xf32>
    %125 = arith.mulf %52, %124 : vector<8x1xf32>
    %126 = arith.addf %121, %125 : vector<8x1xf32>
    %127 = arith.mulf %47, %77 : vector<8x1xf32>
    %128 = arith.mulf %127, %56 : vector<8x1xf32>
    %129 = arith.addf %126, %128 : vector<8x1xf32>
    %cst_26 = arith.constant 0.000000e+00 : f32
    %130 = vector.broadcast %cst_26 : f32 to vector<8x1xf32>
    %131 = arith.select %84, %129, %130 : vector<8x1xi1>, vector<8x1xf32>
    %132 = vector.broadcast %131 : vector<8x1xf32> to vector<8x16xf32>
    %133 = arith.mulf %20, %132 : vector<8x16xf32>
    %134 = arith.addf %117, %133 : vector<8x16xf32>
    %135 = arith.mulf %46, %47 : vector<8x1xf32>
    %136 = arith.mulf %74, %75 : vector<8x1xf32>
    %137 = arith.addf %135, %136 : vector<8x1xf32>
    %138 = arith.mulf %46, %137 : vector<8x1xf32>
    %139 = arith.mulf %46, %75 : vector<8x1xf32>
    %140 = arith.mulf %74, %47 : vector<8x1xf32>
    %141 = arith.subf %139, %140 : vector<8x1xf32>
    %142 = arith.mulf %52, %141 : vector<8x1xf32>
    %143 = arith.addf %138, %142 : vector<8x1xf32>
    %144 = arith.mulf %77, %79 : vector<8x1xf32>
    %145 = arith.mulf %144, %56 : vector<8x1xf32>
    %146 = arith.addf %143, %145 : vector<8x1xf32>
    %cst_27 = arith.constant 0.000000e+00 : f32
    %147 = vector.broadcast %cst_27 : f32 to vector<8x1xf32>
    %148 = arith.select %84, %146, %147 : vector<8x1xi1>, vector<8x1xf32>
    %149 = vector.broadcast %148 : vector<8x1xf32> to vector<8x16xf32>
    %150 = arith.mulf %8, %149 : vector<8x16xf32>
    %151 = arith.mulf %47, %47 : vector<8x1xf32>
    %152 = arith.mulf %75, %75 : vector<8x1xf32>
    %153 = arith.addf %151, %152 : vector<8x1xf32>
    %154 = arith.mulf %46, %153 : vector<8x1xf32>
    %155 = arith.mulf %47, %75 : vector<8x1xf32>
    %156 = arith.mulf %75, %47 : vector<8x1xf32>
    %157 = arith.subf %155, %156 : vector<8x1xf32>
    %158 = arith.mulf %52, %157 : vector<8x1xf32>
    %159 = arith.addf %154, %158 : vector<8x1xf32>
    %160 = arith.mulf %79, %79 : vector<8x1xf32>
    %161 = arith.mulf %160, %56 : vector<8x1xf32>
    %162 = arith.addf %159, %161 : vector<8x1xf32>
    %cst_28 = arith.constant 1.000000e+00 : f32
    %163 = vector.broadcast %cst_28 : f32 to vector<8x1xf32>
    %164 = arith.select %84, %162, %163 : vector<8x1xi1>, vector<8x1xf32>
    %165 = vector.broadcast %164 : vector<8x1xf32> to vector<8x16xf32>
    %166 = arith.mulf %14, %165 : vector<8x16xf32>
    %167 = arith.addf %150, %166 : vector<8x16xf32>
    %168 = arith.mulf %48, %47 : vector<8x1xf32>
    %169 = arith.mulf %76, %75 : vector<8x1xf32>
    %170 = arith.addf %168, %169 : vector<8x1xf32>
    %171 = arith.mulf %46, %170 : vector<8x1xf32>
    %172 = arith.mulf %48, %75 : vector<8x1xf32>
    %173 = arith.mulf %76, %47 : vector<8x1xf32>
    %174 = arith.subf %172, %173 : vector<8x1xf32>
    %175 = arith.mulf %52, %174 : vector<8x1xf32>
    %176 = arith.addf %171, %175 : vector<8x1xf32>
    %177 = arith.mulf %47, %79 : vector<8x1xf32>
    %178 = arith.mulf %177, %56 : vector<8x1xf32>
    %179 = arith.addf %176, %178 : vector<8x1xf32>
    %cst_29 = arith.constant 0.000000e+00 : f32
    %180 = vector.broadcast %cst_29 : f32 to vector<8x1xf32>
    %181 = arith.select %84, %179, %180 : vector<8x1xi1>, vector<8x1xf32>
    %182 = vector.broadcast %181 : vector<8x1xf32> to vector<8x16xf32>
    %183 = arith.mulf %20, %182 : vector<8x16xf32>
    %184 = arith.addf %167, %183 : vector<8x16xf32>
    %185 = arith.mulf %46, %48 : vector<8x1xf32>
    %186 = arith.mulf %74, %76 : vector<8x1xf32>
    %187 = arith.addf %185, %186 : vector<8x1xf32>
    %188 = arith.mulf %46, %187 : vector<8x1xf32>
    %189 = arith.mulf %46, %76 : vector<8x1xf32>
    %190 = arith.mulf %74, %48 : vector<8x1xf32>
    %191 = arith.subf %189, %190 : vector<8x1xf32>
    %192 = arith.mulf %52, %191 : vector<8x1xf32>
    %193 = arith.addf %188, %192 : vector<8x1xf32>
    %194 = arith.mulf %77, %47 : vector<8x1xf32>
    %195 = arith.mulf %194, %56 : vector<8x1xf32>
    %196 = arith.addf %193, %195 : vector<8x1xf32>
    %cst_30 = arith.constant 0.000000e+00 : f32
    %197 = vector.broadcast %cst_30 : f32 to vector<8x1xf32>
    %198 = arith.select %84, %196, %197 : vector<8x1xi1>, vector<8x1xf32>
    %199 = vector.broadcast %198 : vector<8x1xf32> to vector<8x16xf32>
    %200 = arith.mulf %8, %199 : vector<8x16xf32>
    %201 = arith.mulf %47, %48 : vector<8x1xf32>
    %202 = arith.mulf %75, %76 : vector<8x1xf32>
    %203 = arith.addf %201, %202 : vector<8x1xf32>
    %204 = arith.mulf %46, %203 : vector<8x1xf32>
    %205 = arith.mulf %47, %76 : vector<8x1xf32>
    %206 = arith.mulf %75, %48 : vector<8x1xf32>
    %207 = arith.subf %205, %206 : vector<8x1xf32>
    %208 = arith.mulf %52, %207 : vector<8x1xf32>
    %209 = arith.addf %204, %208 : vector<8x1xf32>
    %210 = arith.mulf %79, %47 : vector<8x1xf32>
    %211 = arith.mulf %210, %56 : vector<8x1xf32>
    %212 = arith.addf %209, %211 : vector<8x1xf32>
    %cst_31 = arith.constant 0.000000e+00 : f32
    %213 = vector.broadcast %cst_31 : f32 to vector<8x1xf32>
    %214 = arith.select %84, %212, %213 : vector<8x1xi1>, vector<8x1xf32>
    %215 = vector.broadcast %214 : vector<8x1xf32> to vector<8x16xf32>
    %216 = arith.mulf %14, %215 : vector<8x16xf32>
    %217 = arith.addf %200, %216 : vector<8x16xf32>
    %218 = arith.mulf %48, %48 : vector<8x1xf32>
    %219 = arith.mulf %76, %76 : vector<8x1xf32>
    %220 = arith.addf %218, %219 : vector<8x1xf32>
    %221 = arith.mulf %46, %220 : vector<8x1xf32>
    %222 = arith.mulf %48, %76 : vector<8x1xf32>
    %223 = arith.mulf %76, %48 : vector<8x1xf32>
    %224 = arith.subf %222, %223 : vector<8x1xf32>
    %225 = arith.mulf %52, %224 : vector<8x1xf32>
    %226 = arith.addf %221, %225 : vector<8x1xf32>
    %227 = arith.mulf %47, %47 : vector<8x1xf32>
    %228 = arith.mulf %227, %56 : vector<8x1xf32>
    %229 = arith.addf %226, %228 : vector<8x1xf32>
    %cst_32 = arith.constant 1.000000e+00 : f32
    %230 = vector.broadcast %cst_32 : f32 to vector<8x1xf32>
    %231 = arith.select %84, %229, %230 : vector<8x1xi1>, vector<8x1xf32>
    %232 = vector.broadcast %231 : vector<8x1xf32> to vector<8x16xf32>
    %233 = arith.mulf %20, %232 : vector<8x16xf32>
    %234 = arith.addf %217, %233 : vector<8x16xf32>
    %cst_33 = arith.constant dense<0.000000e+00> : vector<8x8xf32>
    %235 = tpu.matmul %134, %134, %cst_33 {dimension_numbers = #tpu.dot_dimension_numbers<[1], [1], [0], [0], [0, 0, 1, 0], [], []>, precision = #tpu.contract_precision<fp32>} : vector<8x16xf32>, vector<8x16xf32>, vector<8x8xf32> -> vector<8x8xf32>
    %cst_34 = arith.constant dense<0.000000e+00> : vector<8x8xf32>
    %236 = tpu.matmul %184, %184, %cst_34 {dimension_numbers = #tpu.dot_dimension_numbers<[1], [1], [0], [0], [0, 0, 1, 0], [], []>, precision = #tpu.contract_precision<fp32>} : vector<8x16xf32>, vector<8x16xf32>, vector<8x8xf32> -> vector<8x8xf32>
    %237 = arith.addf %235, %236 : vector<8x8xf32>
    %cst_35 = arith.constant dense<0.000000e+00> : vector<8x8xf32>
    %238 = tpu.matmul %234, %234, %cst_35 {dimension_numbers = #tpu.dot_dimension_numbers<[1], [1], [0], [0], [0, 0, 1, 0], [], []>, precision = #tpu.contract_precision<fp32>} : vector<8x16xf32>, vector<8x16xf32>, vector<8x8xf32> -> vector<8x8xf32>
    %239 = arith.addf %237, %238 : vector<8x8xf32>
    %240 = tpu.iota {dimensions = array<i32: 0>} : vector<8x8xi32>
    %241 = tpu.iota {dimensions = array<i32: 1>} : vector<8x8xi32>
    %242 = arith.cmpi eq, %240, %241 : vector<8x8xi32>
    %cst_36 = arith.constant 0.000000e+00 : f32
    %243 = vector.broadcast %cst_36 : f32 to vector<8x8xf32>
    %244 = arith.select %242, %239, %243 : vector<8x8xi1>, vector<8x8xf32>
    %cst_37 = arith.constant dense<0.000000e+00> : vector<8xf32>
    %245 = vector.multi_reduction <add>, %244, %cst_37 [1] : vector<8x8xf32> to vector<8xf32>
    %246 = vector.shape_cast %245 : vector<8xf32> to vector<8x1xf32>
    %cst_38 = arith.constant dense<0.000000e+00> : vector<8xf32>
    %247 = vector.multi_reduction <add>, %244, %cst_38 [0] : vector<8x8xf32> to vector<8xf32>
    %248 = vector.shape_cast %247 : vector<8xf32> to vector<1x8xf32>
    %249 = vector.broadcast %246 : vector<8x1xf32> to vector<8x8xf32>
    %250 = vector.broadcast %248 : vector<1x8xf32> to vector<8x8xf32>
    %251 = arith.addf %249, %250 : vector<8x8xf32>
    %cst_39 = arith.constant 2.000000e+00 : f32
    %252 = vector.broadcast %cst_39 : f32 to vector<8x8xf32>
    %253 = arith.mulf %252, %239 : vector<8x8xf32>
    %254 = arith.subf %251, %253 : vector<8x8xf32>
    %cst_40 = arith.constant 0.000000e+00 : f32
    %255 = vector.broadcast %cst_40 : f32 to vector<8x8xf32>
    %256 = arith.maximumf %254, %255 : vector<8x8xf32>
    %cst_41 = arith.constant -1.000000e+00 : f32
    %257 = vector.broadcast %cst_41 : f32 to vector<8x8xf32>
    %258 = arith.mulf %257, %256 : vector<8x8xf32>
    %259 = math.exp %258 : vector<8x8xf32>
    %cst_42 = arith.constant 1.000000e+00 : f32
    %260 = vector.broadcast %cst_42 : f32 to vector<8x8xf32>
    %261 = arith.select %242, %260, %259 : vector<8x8xi1>, vector<8x8xf32>
    %c0_43 = arith.constant 0 : index
    %c0_44 = arith.constant 0 : index
    %262 = vector.load %arg4[%c0_43, %c0_44] : memref<8x8xf32, #tpu.memory_space<vmem>>, vector<8x8xf32>
    tpu.vector_store %arg4[%c0_43, %c0_44], %261 {strides = array<i32>} : memref<8x8xf32, #tpu.memory_space<vmem>>, vector<8x8xf32>,
    return
  }
  func.func @transform_0(%arg0: i32) -> (i32, i32) {
    %c0_i32 = arith.constant 0 : i32
    %c0_i32_0 = arith.constant 0 : i32
    %c0_i32_1 = arith.constant 0 : i32
    return %c0_i32, %c0_i32_0 : i32, i32
  }
  func.func @transform_1(%arg0: i32) -> (i32, i32) {
    %c0_i32 = arith.constant 0 : i32
    %c0_i32_0 = arith.constant 0 : i32
    %c0_i32_1 = arith.constant 0 : i32
    return %c0_i32, %c0_i32_0 : i32, i32
  }
  func.func @transform_2(%arg0: i32) -> (i32, i32) {
    %c0_i32 = arith.constant 0 : i32
    %c0_i32_0 = arith.constant 0 : i32
    %c0_i32_1 = arith.constant 0 : i32
    return %c0_i32, %c0_i32_0 : i32, i32
  }
  func.func @transform_3(%arg0: i32) -> (i32, i32) {
    %c0_i32 = arith.constant 0 : i32
    %c0_i32_0 = arith.constant 0 : i32
    %c0_i32_1 = arith.constant 0 : i32
    return %c0_i32, %c0_i32_0 : i32, i32
  }
}

</mosaic_0001>

<bundles_post_ra>
// kernel: custom-call.2
= control target key start
LH: loop header
LB: loop body
LE: loop exit
PB: predicated region body
PF: predicated region fallthrough
CT: control target
= control target key end

     0   :  { %11 = vsyncpa [#allocation14], 0  ;;  %s1829_s0 = inlined_call_operand.vmem [shape: f32[4,4], index: 0, kind: input, shape index: {}]   ;;  %s1830_s1 = inlined_call_operand.vmem [shape: f32[4,4], index: 1, kind: input, shape index: {}]   ;;  %s1831_s2 = inlined_call_operand.vmem [shape: f32[4,4], index: 2, kind: input, shape index: {}]   ;;  %s1832_s3 = inlined_call_operand.vmem [shape: f32[4,4], index: 3, kind: input, shape index: {}]   ;;  %s1833_s4 = inlined_call_operand.vmem [shape: f32[4], index: 4, kind: output, shape index: {0}]   ;;  %s1834_s5 = inlined_call_operand.vmem [shape: f32[4], index: 5, kind: output, shape index: {1}]   ;;  %s1835_s6 = inlined_call_operand.hbm [shape: f32[4,4], index: 6, kind: output, shape index: {2}]   ;;  %s1836_s7 = inlined_call_operand.hbm [shape: f32[4,4], index: 7, kind: output, shape index: {3}]   ;;  %s1837_s8 = inlined_call_operand.hbm [shape: f32[4,4], index: 8, kind: output, shape index: {4}]   ;;  %s1838_s9 = inlined_call_operand.hbm [shape: f32[4,4], index: 9, kind: output, shape index: {5}]  }
   0x1   :  { %12 = vsyncpa [#allocation17], 0 }
   0x2   :  { %13 = vsyncpa [#allocation22], 0  ;;  %v75_v0 = vld [vmem:[%s1829_s0] sm:$0xf]  ;;  %v303_v2 = vlaneseq  ;;  %v1541_v7 = vmov 0.0   ;;  %s302_s0 = smov [#allocation12] }
   0x3   :  { %v138_v1 = vld [vmem:[%s1830_s1] sm:$0xf]  ;;  %76 = vst [vmem:[#allocation1] sm:$0xf] %v75_v0  ;;  %298 = vst [vmem:[#allocation12] sm:$0xff] %v1541_v7  ;;  %s315_s1 = smov [#allocation20] }
   0x4   :  { %139 = vst [vmem:[#allocation3] sm:$0xf] %v138_v1  ;;  %v201_v3 = vld [vmem:[%s1831_s2] sm:$0xf]  ;;  %v1610_v5 = vand.u32 127, %v303_v2  ;;  %v1612_v6 = vshrl.u32 %v303_v2, 7 }
   0x5   :  { %v264_v4 = vld [vmem:[%s1832_s3] sm:$0xf]  ;;  %202 = vst [vmem:[#allocation5] sm:$0xf] %v201_v3  ;;  %299 = vst [vmem:[#allocation15] sm:$0xff] %v1541_v7  ;;  %s286_s2 = smov [#allocation23] }
   0x6   :  { %265 = vst [vmem:[#allocation7] sm:$0xf] %v264_v4  ;;  %300 = vst [vmem:[#allocation18] sm:$0xff] %v1541_v7  ;;  %v305_v5 = vmov %v1610_v5  ;;  %v308_v6 = vmov %v1612_v6  ;;  %s289_s3 = smov [#allocation24]  ;;  %s292_s17 = smov [#allocation25]  ;;  %vm1245_vm2 = vcmp.lt.s32.totalorder %v1610_v5, 4 }
   0x7   :  { %301 = vst [vmem:[#allocation20] sm:$0xff] %v1541_v7  ;;  %v318_v5 = vmov %v1610_v5  ;;  %v321_v6 = vmov %v1612_v6  ;;  %vm312_vm0 = vcmp.eq.s32.totalorder %v308_v6, %v305_v5  ;;  %s295_s18 = smov [#allocation26]  ;;  %s1241_s19 = smov [#allocation23] }
   0x8   :  { %vm325_vm1 = vcmp.eq.s32.totalorder %v321_v6, %v318_v5  ;;  %s1258_s20 = smov [#allocation24]  ;;  %v1237_v5 = vmov %v1610_v5  ;;  %v1240_v6 = vmov %v1612_v6  ;;  %s1275_s21 = smov [#allocation25] }
   0x9   :  { %s1292_s22 = smov [#allocation26]  ;;  %vm1250_vm3 = vcmp.eq.s32.totalorder %v1240_v6, %v1237_v5  ;;  %v1288_v5 = vmov %v1610_v5  ;;  %v1257_v6 = vmov %v1612_v6 }
   0xa   :  { %v269_v8 = vld [vmem:[#allocation1] sm:$0xf]  ;;  %v309_v12 = vld [vmem:[%s302_s0] sm:$0xf]  ;;  %v1254_v5 = vmov %v1610_v5  ;;  %v1291_v6 = vmov %v1612_v6 }
   0xb   :  { %v274_v9 = vld [vmem:[#allocation3] sm:$0xf]  ;;  %270 = vst [vmem:[#allocation0] sm:$0xf] %v269_v8  ;;  %v313_v14 = vsel %vm312_vm0, 1.0, %v309_v12  ;;  %v1271_v5 = vmov %v1610_v5  ;;  %v1274_v6 = vmov %v1612_v6  ;;  %vm1301_vm4 = vcmp.eq.s32.totalorder %v1291_v6, %v1288_v5 }
   0xc   :  { %275 = vst [vmem:[#allocation2] sm:$0xf] %v274_v9  ;;  %v279_v10 = vld [vmem:[#allocation5] sm:$0xf]  ;;  %314 = vst [vmem:[%s302_s0] sm:$0xf] %v313_v14 }
   0xd   :  { %v284_v11 = vld [vmem:[#allocation7] sm:$0xf]  ;;  %280 = vst [vmem:[#allocation4] sm:$0xf] %v279_v10 }
   0xe   :  { %285 = vst [vmem:[#allocation6] sm:$0xf] %v284_v11  ;;  %v322_v13 = vld [vmem:[%s315_s1] sm:$0xf] }
   0xf   :  { %v326_v15 = vsel %vm325_vm1, 1.0, %v322_v13 }
  0x10   :  { %327 = vst [vmem:[%s315_s1] sm:$0xf] %v326_v15 }
  0x12   :  { %v287_v16 = vld [vmem:[#allocation0] sm:$0xff] }
  0x13   :  { %v290_v17 = vld [vmem:[#allocation2] sm:$0xff]  ;;  %288 = vst [vmem:[%s286_s2] sm:$0xff] %v287_v16 }
  0x14   :  { %291 = vst [vmem:[%s289_s3] sm:$0xff] %v290_v17  ;;  %v293_v18 = vld [vmem:[#allocation4] sm:$0xff] }
  0x15   :  { %v296_v19 = vld [vmem:[#allocation6] sm:$0xff]  ;;  %294 = vst [vmem:[%s292_s17] sm:$0xff] %v293_v18 }
  0x16   :  { %297 = vst [vmem:[%s295_s18] sm:$0xff] %v296_v19 }
  0x1a   :  { %v1247_v20 = vld [vmem:[%s1241_s19] sm:$0xf] }
  0x1b   :  { %v1264_v21 = vld [vmem:[%s1258_s20] sm:$0xf]  ;;  %v1248_v22 = vsel %vm1245_vm2, %v1247_v20, 0.0 }
  0x1c   :  { %v1265_v23 = vsel %vm1245_vm2, %v1264_v21, 0.0  ;;  %v1281_v24 = vld [vmem:[%s1275_s21] sm:$0xf]  ;;  %v1249_v26 = vmul.f32 %v1248_v22, %v1248_v22 }
  0x1d   :  { %v1298_v25 = vld [vmem:[%s1292_s22] sm:$0xf]  ;;  %v1266_v27 = vmul.f32 %v1265_v23, %v1265_v23  ;;  %v1282_v28 = vsel %vm1245_vm2, %v1281_v24, 0.0 }
  0x1e   :  { %v1299_v29 = vsel %vm1245_vm2, %v1298_v25, 0.0  ;;  %v1283_v30 = vmul.f32 %v1282_v28, %v1282_v28  ;;  %v1251_v33 = vsel %vm1250_vm3, 0.0, %v1249_v26 }
  0x1f   :  { %v1268_v31 = vadd.f32 %v1266_v27, %v1249_v26  ;;  %v1300_v32 = vmul.f32 %v1299_v29, %v1299_v29  ;;  %v1267_v34 = vadd.f32 %v1266_v27, %v1251_v33 }
  0x21   :  { %v1285_v35 = vadd.f32 %v1283_v30, %v1268_v31  ;;  %v1284_v36 = vadd.f32 %v1283_v30, %v1267_v34  ;;  %v1302_v37 = vsel %vm1301_vm4, 0.0, %v1300_v32 }
  0x23   :  { %v1304_v38 = vadd.f32 %v1300_v32, %v1285_v35  ;;  %v1303_v39 = vadd.f32 %v1302_v37, %v1284_v36 }
  0x25   :  { %1305 = vadd.xlane.f32.xlu0 %v1304_v38 }
  0x29   :  { %1313 = vadd.xlane.f32.xlu0 %v1303_v39 }
  0xae   :  { %v1306_v40 = vpop.xlane.xlu0 %1305 }
  0xaf   :  { %v1307_v41 = vrot.slane %v1306_v40, 4 }
  0xb1   :  { %v1308_v42 = vadd.f32 %v1307_v41, %v1306_v40 }
  0xb2   :  { %v1314_v43 = vpop.xlane.xlu0 %1313 }
  0xb3   :  { %v1309_v44 = vrot.slane %v1308_v42, 2  ;;  %v1315_v45 = vrot.slane %v1314_v43, 4 }
  0xb5   :  { %v1316_v46 = vadd.f32 %v1315_v45, %v1314_v43  ;;  %v1310_v47 = vadd.f32 %v1309_v44, %v1308_v42 }
  0xb7   :  { %v1317_v48 = vrot.slane %v1316_v46, 2  ;;  %v1311_v50 = vrot.slane %v1310_v47, 1 }
  0xb9   :  { %v1318_v49 = vadd.f32 %v1317_v48, %v1316_v46  ;;  %v1312_v53 = vadd.f32 %v1311_v50, %v1310_v47 }
  0xbb   :  { %v1319_v51 = vrot.slane %v1318_v49, 1 }
  0xbd   :  { %v1320_v52 = vadd.f32 %v1319_v51, %v1318_v49 }
  0xbf   :  { %1400 = vpush %v1320_v52 }
  0xc0   :  { %1402 = vpush %v1312_v53 }
  0xf0   :  { %s1401_s23 = spop %1400 }
  0xf1   :  { %s1403_s24 = spop %1402 }
  0xf2   :  { %s1323_s25 = smul.f32 1e-10, %s1403_s24 }
  0xf4   :  { %p1324_p0 = scmp.le.f32.partialorder %s1401_s23, %s1323_s25 }
  0xf5   :  { %s1636_s26 = smov (!%p1324_p0), 0  }
  0xf6   :  { %1327 = sbr.rel (%p1324_p0) target bundleno = 928 (0x3a0), region = 324 }
  0xfb LB: > { %s1641_s27 = smov 0   ;;  %s1535_s26 = sphi %s1636_s26, %s1839_s26  }
  0xfc LB: >> { %s432_s28 = smov [#allocation23]  ;;  %v436_v5 = vmov %v1610_v5  ;;  %v439_v6 = vmov %v1612_v6  ;;  %s452_s29 = smov [#allocation24]  ;;  %vm755_vm14 = vcmp.eq.s32.totalorder %v1612_v6, 0  ;;  %vm767_vm15 = vcmp.eq.s32.totalorder %v1612_v6, 3  ;;  %s1539_s27 = sphi %s1641_s27, %s431_s27  }
  0xfd   : >> { %v456_v5 = vmov %v1610_v5  ;;  %v459_v6 = vmov %v1612_v6  ;;  %v440_v54 = vld [vmem:[%s432_s28] sm:$0xf]  ;;  %vm443_vm5 = vcmp.eq.s32.totalorder %v439_v6, %v436_v5  ;;  %s472_s30 = smov [#allocation26]  ;;  %s433_s10 = smov [#allocation27] }
  0xfe   : >> { %vm463_vm6 = vcmp.eq.s32.totalorder %v459_v6, %v456_v5  ;;  %v476_v5 = vmov %v1610_v5  ;;  %v479_v6 = vmov %v1612_v6  ;;  %v444_v55 = vsel %vm443_vm5, %v440_v54, 0.0  ;;  %v460_v56 = vld [vmem:[%s452_s29] sm:$0xf]  ;;  %s453_s11 = smov [#allocation28]  ;;  %s473_s12 = smov [#allocation29] }
  0xff   : >> { %vm483_vm7 = vcmp.eq.s32.totalorder %v479_v6, %v476_v5  ;;  %v445_v57 = vrot.slane %v444_v55, 4  ;;  %v464_v58 = vsel %vm463_vm6, %v460_v56, 0.0  ;;  %v480_v59 = vld [vmem:[%s472_s30] sm:$0xf]  ;;  %s496_s13 = smov [#allocation28]  ;;  %s494_s14 = smov [#allocation27]  ;;  %v545_v5 = vmov %v1610_v5 }
 0x100   : >> { %v465_v60 = vrot.slane %v464_v58, 4  ;;  %v484_v61 = vsel %vm483_vm7, %v480_v59, 0.0  ;;  %s498_s15 = smov [#allocation29]  ;;  %s533_s16 = smov [#allocation30]  ;;  %v548_v6 = vmov %v1612_v6  ;;  %v560_v5 = vmov %v1610_v5 }
 0x101   : >> { %v446_v62 = vadd.f32 %v445_v57, %v444_v55  ;;  %v485_v63 = vrot.slane %v484_v61, 4  ;;  %s535_s0 = smov [#allocation31]  ;;  %s492_s1 = smov [#allocation32]  ;;  %v563_v6 = vmov %v1612_v6  ;;  %vm550_vm12 = vcmp.eq.s32.totalorder %v548_v6, %v545_v5 }
 0x102   : >> { %v466_v0 = vadd.f32 %v465_v60, %v464_v58  ;;  %s493_s2 = smov [#allocation33]  ;;  %s537_s1 = smov %s492_s1  ;;  %vm565_vm13 = vcmp.eq.s32.totalorder %v563_v6, %v560_v5  ;;  %v658_v5 = vmov %v1610_v5  ;;  %v661_v6 = vmov %v1612_v6 }
 0x103   : >> { %v447_v1 = vrot.slane %v446_v62, 2  ;;  %v486_v2 = vadd.f32 %v485_v63, %v484_v61  ;;  %s539_s2 = smov %s493_s2  ;;  %s541_s3 = smov [#allocation32]  ;;  %v672_v5 = vmov %v1610_v5  ;;  %v675_v6 = vmov %v1612_v6 }
 0x104   : >> { %v467_v3 = vrot.slane %v466_v0, 2  ;;  %s556_s17 = smov [#allocation33]  ;;  %s554_s18 = smov [#allocation34]  ;;  %vm665_vm0 = vcmp.eq.s32.totalorder %v661_v6, %v658_v5  ;;  %v631_v5 = vmov %v1610_v5  ;;  %v634_v6 = vmov %v1612_v6 }
 0x105   : >> { %v448_v4 = vadd.f32 %v447_v1, %v446_v62  ;;  %v487_v7 = vrot.slane %v486_v2, 2  ;;  %s571_s19 = smov [#allocation34]  ;;  %s1656_s20 = smov [#allocation23]  ;;  %v645_v5 = vmov %v1610_v5  ;;  %v648_v6 = vmov %v1612_v6 }
 0x106   : >> { %v468_v8 = vadd.f32 %v467_v3, %v466_v0  ;;  %s569_s21 = smov [#allocation35]  ;;  %s1658_s22 = smov [#allocation24]  ;;  %v579_v53 = vld [vmem:[%s1656_s20] sm:$0xf]  ;;  %vm680_vm1 = vcmp.eq.s32.totalorder %v675_v6, %v672_v5  ;;  %vm639_vm3 = vcmp.eq.s32.totalorder %v634_v6, %v631_v5  ;;  %vm652_vm4 = vcmp.eq.s32.totalorder %v648_v6, %v645_v5 }
 0x107   : >> { %v449_v9 = vrot.slane %v448_v4, 1  ;;  %v488_v10 = vadd.f32 %v487_v7, %v486_v2  ;;  %s1660_s23 = smov [#allocation25]  ;;  %s1662_s24 = smov [#allocation26]  ;;  %v580_v54 = vld [vmem:[%s1658_s22] sm:$0xf]  ;;  %vm694_vm5 = vcmp.eq.s32.totalorder %v1610_v5, 0 }
 0x108   : >> { %v469_v11 = vrot.slane %v468_v8, 1  ;;  %s1664_s25 = smov [#allocation12]  ;;  %s1666_s28 = smov [#allocation15]  ;;  %v581_v55 = vld [vmem:[%s1660_s23] sm:$0xf]  ;;  %vm698_vm6 = vcmp.eq.s32.totalorder %v1610_v5, 1 }
 0x109   : >> { %v450_v12 = vadd.f32 %v449_v9, %v448_v4  ;;  %v489_v13 = vrot.slane %v488_v10, 1  ;;  %s1668_s29 = smov [#allocation18]  ;;  %s795_s30 = smov [#allocation34]  ;;  %v582_v56 = vld [vmem:[%s1662_s24] sm:$0xf]  ;;  %vm711_vm7 = vcmp.eq.s32.totalorder %v1610_v5, 3 }
 0x10a   : >> { %v470_v14 = vadd.f32 %v469_v11, %v468_v8  ;;  %v803_v57 = vld [vmem:[%s1664_s25] sm:$0xf]  ;;  %s431_s27 = sadd.s32 1, %s1539_s27  }
 0x10b   : >> { %451 = vst [vmem:[%s433_s10] sm:$0x1] %v450_v12  ;;  %v490_v15 = vadd.f32 %v489_v13, %v488_v10  ;;  %s1672_s10 = smov [#allocation20]  ;;  %v804_v58 = vld [vmem:[%s1666_s28] sm:$0xf]  ;;  %p428_p1 = scmp.ge.s32.totalorder %s431_s27, 7  }
 0x10c   : >> { %471 = vst [vmem:[%s453_s11] sm:$0x1] %v470_v14  ;;  %v805_v59 = vld [vmem:[%s1668_s29] sm:$0xf]  ;;  %s573_s11 = smov [#allocation35]  ;;  %v332_v5 = vmov (%p428_p1), %v1610_v5  ;;  %v335_v6 = vmov (%p428_p1), %v1612_v6 }
 0x10d   : >> { %491 = vst [vmem:[%s473_s12] sm:$0x1] %v490_v15  ;;  %v806_v61 = vld [vmem:[%s1672_s10] sm:$0xf]  ;;  %s797_s12 = smov [#allocation35]  ;;  %v385_v5 = vmov (%p428_p1), %v1610_v5 }
 0x112   : >> { %v495_v18 = vld [vmem:[%s494_s14] sm:$0xff]  ;;  %s601_s14 = smov [#allocation33] }
 0x113   : >> { %v497_v16 = vld [vmem:[%s496_s13] sm:$0xff]  ;;  %v518_v33 = vand.u32 2147483647, %v495_v18  ;;  %s599_s13 = smov [#allocation32] }
 0x114   : >> { %v501_v17 = vmul.f32 2.0, %v497_v16  ;;  %v499_v19 = vld [vmem:[%s498_s15] sm:$0xff]  ;;  %v519_v36 = vand.u32 2147483647, %v497_v16  ;;  %s1688_s15 = smov [#allocation12] }
 0x115   : >> { %v500_v20 = vsub.f32 %v499_v19, %v495_v18  ;;  %v520_v34 = vand.u32 2147483647, %v499_v19 }
 0x116   : >> { %1431 = vrcp.f32 %v501_v17 }
 0x117   : >> { %v521_v35 = vmin.f32 %v518_v33, %v520_v34 }
 0x119   : >> { %v522_v37 = vmul.f32 1.1920929e-08, %v521_v35 }
 0x11b   : >> { %vm523_vm11 = vcmp.le.f32.partialorder %v519_v36, %v522_v37 }
 0x123   : >> { %v1432_v21 = vpop.eup %1431 }
 0x124   : >> { %v503_v22 = vmul.f32 %v1432_v21, %v500_v20 }
 0x126   : >> { %v505_v23 = vmul.f32 %v503_v22, %v503_v22  ;;  %vm504_vm10 = vcmp.ge.f32.partialorder %v503_v22, 0.0 }
 0x128   : >> { %v506_v24 = vadd.f32 1.0, %v505_v23 }
 0x12a   : >> { %1433 = vrsqrt.f32 %v506_v24  ;;  %vm509_vm8 = vcmp.eq.f32.partialorder %v506_v24, inf  ;;  %v512_v26 = vand.u32 2147483648, %v506_v24  ;;  %vm511_vm9 = vcmp.eq.f32.partialorder %v506_v24, 0.0 }
 0x137   : >> { %v1434_v25 = vpop.eup %1433 }
 0x138   : >> { %v508_v27 = vmul.f32 %v1434_v25, %v506_v24 }
 0x13a   : >> { %v510_v28 = vsel %vm509_vm8, %v506_v24, %v508_v27  ;;  %vm347_vm8 = vcmp.eq.s32.totalorder (%p428_p1), %v335_v6, %v332_v5  ;;  %v388_v6 = vmov (%p428_p1), %v1612_v6  ;;  %v351_v5 = vmov (%p428_p1), %v1610_v5 }
 0x13b   : >> { %v513_v29 = vsel %vm511_vm9, %v512_v26, %v510_v28  ;;  %v354_v6 = vmov (%p428_p1), %v1612_v6  ;;  %v368_v5 = vmov (%p428_p1), %v1610_v5  ;;  %vm400_vm9 = vcmp.eq.s32.totalorder (%p428_p1), %v388_v6, %v385_v5 }
 0x13c   : >> { %v514_v30 = vxor.u32 2147483648, %v513_v29  ;;  %v371_v6 = vmov (%p428_p1), %v1612_v6 }
 0x13e   : >> { %v515_v31 = vsel %vm504_vm10, %v513_v29, %v514_v30 }
 0x13f   : >> { %v516_v32 = vadd.f32 %v515_v31, %v503_v22 }
 0x141   : >> { %1435 = vrcp.f32 %v516_v32 }
 0x14e   : >> { %v1436_v38 = vpop.eup %1435 }
 0x14f   : >> { %v524_v39 = vsel %vm523_vm11, 0.0, %v1436_v38 }
 0x150   : >> { %v525_v40 = vmul.f32 %v524_v39, %v524_v39  ;;  %v529_v41 = vmul.f32 %v524_v39, %v497_v16 }
 0x152   : >> { %v526_v42 = vadd.f32 1.0, %v525_v40  ;;  %v530_v43 = vsub.f32 %v495_v18, %v529_v41  ;;  %v532_v44 = vadd.f32 %v529_v41, %v499_v19 }
 0x154   : >> { %1437 = vrsqrt.f32 %v526_v42  ;;  %534 = vst [vmem:[%s533_s16] sm:$0xff] %v530_v43  ;;  %536 = vst [vmem:[%s535_s0] sm:$0xff] %v532_v44  ;;  %s1690_s16 = smov [#allocation25]  ;;  %s1692_s0 = smov [#allocation26] }
 0x161   : >> { %v1438_v45 = vpop.eup %1437 }
 0x162   : >> { %538 = vst [vmem:[%s537_s1] sm:$0xff] %v1438_v45  ;;  %v528_v46 = vmul.f32 %v1438_v45, %v524_v39  ;;  %s1694_s1 = smov [#allocation23] }
 0x164   : >> { %540 = vst [vmem:[%s539_s2] sm:$0xff] %v528_v46  ;;  %s1696_s2 = smov [#allocation18] }
 0x169   : >> { %v542_v47 = vld [vmem:[%s541_s3] ss:$0 sm:$0xff]  ;;  %s1698_s3 = smov [#allocation15] }
 0x16a   : >> { %v551_v48 = vsel %vm550_vm12, %v542_v47, 0.0  ;;  %v600_v27 = vld [vmem:[%s599_s13] ss:$0 sm:$0xff]  ;;  %s771_s13 = smov [#allocation24] }
 0x16b   : >> { %552 = vadd.xlane.f32.xlu0 %v551_v48  ;;  %v557_v49 = vld [vmem:[%s556_s17] ss:$0 sm:$0xff]  ;;  %s1702_s17 = smov [#allocation20] }
 0x16c   : >> { %v566_v50 = vsel %vm565_vm13, %v557_v49, 0.0  ;;  %v602_v28 = vld [vmem:[%s601_s14] ss:$0 sm:$0xff]  ;;  %s748_s14 = smov [#allocation25] }
 0x16f   : >> { %567 = vadd.xlane.f32.xlu0 %v566_v50 }
 0x1f4   : >> { %v553_v51 = vpop.xlane.xlu0 %552 }
 0x1f5   : >> { %555 = vst [vmem:[%s554_s18] sm:$0xff] %v553_v51  ;;  %s1704_s18 = smov [#allocation24] }
 0x1f8   : >> { %v568_v52 = vpop.xlane.xlu0 %567 }
 0x1f9   : >> { %570 = vst [vmem:[%s569_s21] sm:$0xff] %v568_v52  ;;  %s668_s21 = smov [#allocation26] }
 0x1fc   : >> { %v572_v60 = vld [vmem:[%s571_s19] sm:$0xff]  ;;  %s669_s19 = smov [#allocation31] }
 0x1fd   : >> { %v796_v62 = vld [vmem:[%s795_s30] sm:$0xff]  ;;  %v583_v63 = vmul.f32 %v579_v53, %v572_v60  ;;  %v586_v0 = vmul.f32 %v580_v54, %v572_v60  ;;  %v590_v1 = vmul.f32 %v581_v55, %v572_v60  ;;  %v593_v2 = vmul.f32 %v582_v56, %v572_v60  ;;  %s684_s30 = smov [#allocation24] }
 0x1fe   : >> { %v807_v3 = vmul.f32 %v803_v57, %v796_v62  ;;  %v810_v4 = vmul.f32 %v804_v58, %v796_v62  ;;  %v814_v7 = vmul.f32 %v805_v59, %v796_v62  ;;  %v817_v8 = vmul.f32 %v806_v61, %v796_v62 }
 0x200   : >> { %v574_v9 = vld [vmem:[%s573_s11] sm:$0xff]  ;;  %s1749_s11 = smov [#allocation26] }
 0x201   : >> { %v798_v10 = vld [vmem:[%s797_s12] sm:$0xff]  ;;  %v584_v11 = vmul.f32 %v581_v55, %v574_v9  ;;  %v587_v12 = vmul.f32 %v582_v56, %v574_v9  ;;  %v589_v13 = vmul.f32 %v579_v53, %v574_v9  ;;  %v592_v14 = vmul.f32 %v580_v54, %v574_v9  ;;  %s747_s12 = smov [#allocation23] }
 0x202   : >> { %v808_v15 = vmul.f32 %v805_v59, %v798_v10  ;;  %v811_v16 = vmul.f32 %v806_v61, %v798_v10  ;;  %v813_v17 = vmul.f32 %v803_v57, %v798_v10  ;;  %v816_v18 = vmul.f32 %v804_v58, %v798_v10  ;;  %v676_v59 = vld [vmem:[%s669_s19] ss:$0 sm:$0xff] }
 0x203   : >> { %v585_v19 = vsub.f32 %v583_v63, %v584_v11  ;;  %v588_v20 = vsub.f32 %v586_v0, %v587_v12  ;;  %v591_v21 = vadd.f32 %v590_v1, %v589_v13  ;;  %v594_v22 = vadd.f32 %v593_v2, %v592_v14 }
 0x204   : >> { %v809_v23 = vsub.f32 %v807_v3, %v808_v15  ;;  %v812_v24 = vsub.f32 %v810_v4, %v811_v16  ;;  %v815_v25 = vadd.f32 %v814_v7, %v813_v17  ;;  %v818_v26 = vadd.f32 %v817_v8, %v816_v18 }
 0x205   : >> { %596 = vst [vmem:[%s1658_s22] sm:$0xf] %v588_v20  ;;  %598 = vst [vmem:[%s1662_s24] sm:$0xf] %v594_v22  ;;  %s628_s22 = smov [#allocation30]  ;;  %s642_s24 = smov [#allocation24] }
 0x206   : >> { %595 = vst [vmem:[%s1656_s20] sm:$0xf] %v585_v19  ;;  %597 = vst [vmem:[%s1660_s23] sm:$0xf] %v591_v21  ;;  %s655_s20 = smov [#allocation25]  ;;  %s627_s23 = smov [#allocation23]  ;;  %v635_v63 = vld [vmem:[%s628_s22] ss:$0 sm:$0xff] }
 0x207   : >> { %819 = vst [vmem:[%s1664_s25] sm:$0xf] %v809_v23  ;;  %820 = vst [vmem:[%s1666_s28] sm:$0xf] %v812_v24  ;;  %s1746_s25 = smov [#allocation25]  ;;  %s1542_s28 = smov 1  }
 0x208   : >> { %821 = vst [vmem:[%s1668_s29] sm:$0xf] %v815_v25  ;;  %822 = vst [vmem:[%s1672_s10] sm:$0xf] %v818_v26  ;;  %s683_s29 = smov [#allocation23]  ;;  %s1543_s10 = smov 127  }
 0x20c   : >> { %v610_v30 = vld [vmem:[%s1692_s0] sm:$0xf] }
 0x20d   : >> { %v609_v29 = vld [vmem:[%s1690_s16] sm:$0xf]  ;;  %v618_v36 = vmul.f32 %v610_v30, %v602_v28  ;;  %v621_v42 = vmul.f32 %v610_v30, %v600_v27 }
 0x20e   : >> { %v607_v31 = vld [vmem:[%s1694_s1] sm:$0xf]  ;;  %v617_v35 = vmul.f32 %v609_v29, %v600_v27  ;;  %v620_v37 = vmul.f32 %v609_v29, %v602_v28 }
 0x20f   : >> { %v825_v32 = vld [vmem:[%s1688_s15] ss:$0 sm:$0xff]  ;;  %v1387_v34 = vld [vmem:[%s1688_s15 + $0x3] ss:$0 sm:$0xff]  ;;  %v611_v48 = vmul.f32 %v607_v31, %v600_v27  ;;  %v614_v49 = vmul.f32 %v607_v31, %v602_v28 }
 0x210   : >> { %v1386_v33 = vld [vmem:[%s1688_s15 - $0x1] sm:$0xe]  ;;  %v1391_v45 = vld [vmem:[%s1698_s3 + $0x3] ss:$0 sm:$0xff]  ;;  %v619_v47 = vsub.f32 %v617_v35, %v618_v36  ;;  %v622_v53 = vadd.f32 %v621_v42, %v620_v37 }
 0x211   : >> { %v832_v38 = vsel %vm755_vm14, %v825_v32, %v1386_v33  ;;  %v836_v39 = vld [vmem:[%s1696_s2] ss:$0 sm:$0xff]  ;;  %v1389_v40 = vld [vmem:[%s1696_s2 + $0x1] sm:$0x7] }
 0x212   : >> { %v849_v41 = vld [vmem:[%s1698_s3] ss:$0 sm:$0xff]  ;;  %835 = vst [vmem:[%s1688_s15] sm:$0xf] %v832_v38  ;;  %v844_v43 = vsel %vm767_vm15, %v1387_v34, %v1389_v40  ;;  %v1393_v51 = vld [vmem:[%s1702_s17 + $0x1] sm:$0x7]  ;;  %625 = vst [vmem:[%s1690_s16] sm:$0xf] %v619_v47 }
 0x213   : >> { %v1390_v44 = vld [vmem:[%s1698_s3 - $0x1] sm:$0xe]  ;;  %1388 = vst [vmem:[%s1688_s15 + $0x1] sm:$0x1] %v836_v39  ;;  %846 = vst [vmem:[%s1696_s2] sm:$0xf] %v844_v43  ;;  %v868_v54 = vsel %vm767_vm15, %v1391_v45, %v1393_v51  ;;  %s772_s15 = smov [#allocation26] }
 0x214   : >> { %v860_v46 = vld [vmem:[%s1702_s17] ss:$0 sm:$0xff]  ;;  %v856_v50 = vsel %vm755_vm14, %v849_v41, %v1390_v44  ;;  %626 = vst [vmem:[%s1692_s0] sm:$0xf] %v622_v53  ;;  %s871_s16 = sadd.s32 (%p428_p1), 1, %s1535_s26   ;;  %s336_s0 = smov (%p428_p1), [#allocation23] }
 0x215   : >> { %v608_v52 = vld [vmem:[%s1704_s18] sm:$0xf]  ;;  %859 = vst [vmem:[%s1698_s3] sm:$0xf] %v856_v50  ;;  %870 = vst [vmem:[%s1702_s17] sm:$0xf] %v868_v54  ;;  %s372_s2 = smov (%p428_p1), [#allocation25]  ;;  %p424_p2 = scmp.ge.s32.totalorder (%p428_p1), %s871_s16, 15 }
 0x216   : >> { %v612_v55 = vmul.f32 %v608_v52, %v602_v28  ;;  %v615_v56 = vmul.f32 %v608_v52, %v600_v27  ;;  %1392 = vst [vmem:[%s1698_s3 + $0x1] sm:$0x1] %v860_v46  ;;  %s389_s3 = smov (%p428_p1), [#allocation26]  ;;  %s1839_s26 = smov (%p428_p1), %s871_s16 }
 0x218   : >> { %v613_v57 = vsub.f32 %v611_v48, %v612_v55  ;;  %v616_v58 = vadd.f32 %v615_v56, %v614_v49 }
 0x219   : >> { %v662_v60 = vld [vmem:[%s655_s20] sm:$0xf] }
 0x21a   : >> { %623 = vst [vmem:[%s1694_s1] sm:$0xf] %v613_v57  ;;  %624 = vst [vmem:[%s1704_s18] sm:$0xf] %v616_v58  ;;  %v666_v61 = vsel %vm665_vm0, 0.0, %v662_v60  ;;  %s355_s1 = smov (%p428_p1), [#allocation24] }
 0x21b   : >> { %v677_v62 = vld [vmem:[%s668_s21] sm:$0xf]  ;;  %667 = vst [vmem:[%s655_s20] sm:$0xf] %v666_v61 }
 0x21c   : >> { %v681_v0 = vsel %vm680_vm1, %v676_v59, %v677_v62 }
 0x21d   : >> { %682 = vst [vmem:[%s668_s21] sm:$0xf] %v681_v0 }
 0x221   : >> { %v636_v1 = vld [vmem:[%s627_s23] sm:$0xf] }
 0x222   : >> { %v649_v2 = vld [vmem:[%s642_s24] sm:$0xf]  ;;  %v640_v3 = vsel %vm639_vm3, %v635_v63, %v636_v1 }
 0x223   : >> { %v653_v4 = vsel %vm652_vm4, 0.0, %v649_v2  ;;  %641 = vst [vmem:[%s627_s23] sm:$0xf] %v640_v3  ;;  %v721_v7 = vld [vmem:[%s1746_s25] sm:$0xf] }
 0x224   : >> { %654 = vst [vmem:[%s642_s24] sm:$0xf] %v653_v4  ;;  %722 = vrot.lane.b32.xlu0 %v721_v7, %s1542_s28  ;;  %v717_v11 = vld [vmem:[%s1749_s11] sm:$0xf] }
 0x225   : >> { %v738_v12 = vld [vmem:[%s1749_s11] sm:$0xf] }
 0x226   : >> { %v720_v30 = vld [vmem:[%s1746_s25] sm:$0xf] }
 0x22a   : >> { %v689_v8 = vld [vmem:[%s683_s29] sm:$0xf] }
 0x22b   : >> { %690 = vrot.lane.b32.xlu1 %v689_v8, %s1542_s28  ;;  %v685_v9 = vld [vmem:[%s684_s30] sm:$0xf] }
 0x22c   : >> { %v706_v10 = vld [vmem:[%s684_s30] sm:$0xf] }
 0x22d   : >> { %v688_v18 = vld [vmem:[%s683_s29] sm:$0xf] }
 0x22f   : >> { %686 = vrot.lane.b32.xlu1 %v685_v9, %s1542_s28 }
 0x233   : >> { %707 = vrot.lane.b32.xlu1 %v706_v10, %s1543_s10 }
 0x237   : >> { %718 = vrot.lane.b32.xlu1 %v717_v11, %s1542_s28 }
 0x23b   : >> { %739 = vrot.lane.b32.xlu1 %v738_v12, %s1543_s10 }
 0x296   : >> { %v723_v20 = vpop.permute.xlu0 %722 }
 0x297   : >> { %v727_v22 = vsel %vm694_vm5, %v721_v7, %v723_v20 }
 0x29d   : >> { %v691_v13 = vpop.permute.xlu1 %690 }
 0x29e   : >> { %v695_v14 = vsel %vm694_vm5, %v689_v8, %v691_v13 }
 0x2a1   : >> { %v687_v15 = vpop.permute.xlu1 %686 }
 0x2a2   : >> { %v699_v16 = vsel %vm698_vm6, %v687_v15, %v695_v14 }
 0x2a3   : >> { %v705_v17 = vsel %vm1245_vm2, %v699_v16, 0.0 }
 0x2a4   : >> { %713 = vst [vmem:[%s683_s29] sm:$0xf] %v705_v17 }
 0x2a5   : >> { %v708_v19 = vpop.permute.xlu1 %707 }
 0x2a6   : >> { %v712_v21 = vsel %vm711_vm7, %v688_v18, %v708_v19 }
 0x2a7   : >> { %714 = vst [vmem:[%s684_s30] sm:$0xf] %v712_v21 }
 0x2a9   : >> { %v719_v23 = vpop.permute.xlu1 %718 }
 0x2aa   : >> { %v731_v24 = vsel %vm698_vm6, %v719_v23, %v727_v22 }
 0x2ab   : >> { %v749_v25 = vld [vmem:[%s747_s12] ss:$0 sm:$0xff]  ;;  %v1379_v27 = vld [vmem:[%s747_s12 + $0x3] ss:$0 sm:$0xff]  ;;  %v737_v29 = vsel %vm1245_vm2, %v731_v24, 0.0 }
 0x2ac   : >> { %v1378_v26 = vld [vmem:[%s747_s12 - $0x1] sm:$0xe]  ;;  %745 = vst [vmem:[%s1746_s25] sm:$0xf] %v737_v29 }
 0x2ad   : >> { %v756_v28 = vsel %vm755_vm14, %v749_v25, %v1378_v26  ;;  %v740_v31 = vpop.permute.xlu1 %739 }
 0x2ae   : >> { %759 = vst [vmem:[%s747_s12] sm:$0xf] %v756_v28  ;;  %v773_v32 = vld [vmem:[%s771_s13] ss:$0 sm:$0xff]  ;;  %v1383_v34 = vld [vmem:[%s771_s13 + $0x3] ss:$0 sm:$0xff]  ;;  %v744_v35 = vsel %vm711_vm7, %v720_v30, %v740_v31 }
 0x2af   : >> { %v1382_v33 = vld [vmem:[%s771_s13 - $0x1] sm:$0xe]  ;;  %746 = vst [vmem:[%s1749_s11] sm:$0xf] %v744_v35 }
 0x2b0   : >> { %v780_v36 = vsel %vm755_vm14, %v773_v32, %v1382_v33 }
 0x2b1   : >> { %783 = vst [vmem:[%s771_s13] sm:$0xf] %v780_v36 }
 0x2b3   : >> { %v760_v37 = vld [vmem:[%s748_s14] ss:$0 sm:$0xff]  ;;  %v1381_v38 = vld [vmem:[%s748_s14 + $0x1] sm:$0x7] }
 0x2b4   : >> { %1380 = vst [vmem:[%s747_s12 + $0x1] sm:$0x1] %v760_v37  ;;  %v768_v39 = vsel %vm767_vm15, %v1379_v27, %v1381_v38 }
 0x2b5   : >> { %770 = vst [vmem:[%s748_s14] sm:$0xf] %v768_v39 }
 0x2b6   : >> { %v784_v40 = vld [vmem:[%s772_s15] ss:$0 sm:$0xff]  ;;  %v1385_v41 = vld [vmem:[%s772_s15 + $0x1] sm:$0x7] }
 0x2b7   : >> { %1384 = vst [vmem:[%s771_s13 + $0x1] sm:$0x1] %v784_v40  ;;  %v792_v42 = vsel %vm767_vm15, %v1383_v34, %v1385_v41 }
 0x2b8   : >> { %794 = vst [vmem:[%s772_s15] sm:$0xf] %v792_v42  ;;  %430 = sbr.rel (!%p428_p1) target bundleno = 252 (0xfc), region = 319 }
 0x2bb   : > { %v342_v43 = vld [vmem:[%s336_s0] sm:$0xf] (%p428_p1) }
 0x2bc   : > { %v343_v45 = vsel (%p428_p1), %vm1245_vm2, %v342_v43, 0.0  ;;  %v378_v47 = vld [vmem:[%s372_s2] sm:$0xf] (%p428_p1) }
 0x2bd   : > { %v344_v49 = vmul.f32 %v343_v45, %v343_v45  ;;  %v379_v51 = vsel %vm1245_vm2, %v378_v47, 0.0 }
 0x2be   : > { %v361_v44 = vld [vmem:[%s355_s1] sm:$0xf]  ;;  %v380_v53 = vmul.f32 %v379_v51, %v379_v51 }
 0x2bf   : > { %v362_v46 = vsel %vm1245_vm2, %v361_v44, 0.0  ;;  %v395_v48 = vld [vmem:[%s389_s3] sm:$0xf]  ;;  %v348_v56 = vsel %vm347_vm8, 0.0, %v344_v49 }
 0x2c0   : > { %v363_v50 = vmul.f32 %v362_v46, %v362_v46  ;;  %v396_v52 = vsel %vm1245_vm2, %v395_v48, 0.0 }
 0x2c1   : > { %v397_v55 = vmul.f32 %v396_v52, %v396_v52 }
 0x2c2   : > { %v365_v54 = vadd.f32 %v363_v50, %v344_v49  ;;  %v364_v57 = vadd.f32 %v363_v50, %v348_v56 }
 0x2c3   : > { %v401_v60 = vsel %vm400_vm9, 0.0, %v397_v55 }
 0x2c4   : > { %v382_v58 = vadd.f32 %v380_v53, %v365_v54  ;;  %v381_v59 = vadd.f32 %v380_v53, %v364_v57 }
 0x2c6   : > { %v403_v61 = vadd.f32 %v397_v55, %v382_v58  ;;  %v402_v62 = vadd.f32 %v401_v60, %v381_v59 }
 0x2c8   : > { %404 = vadd.xlane.f32.xlu0 %v403_v61 }
 0x2cc   : > { %412 = vadd.xlane.f32.xlu0 %v402_v62 }
 0x351   : > { %v405_v63 = vpop.xlane.xlu0 %404 }
 0x352   : > { %v406_v0 = vrot.slane %v405_v63, 4 }
 0x354   : > { %v407_v1 = vadd.f32 %v406_v0, %v405_v63 }
 0x355   : > { %v413_v2 = vpop.xlane.xlu0 %412 }
 0x356   : > { %v408_v3 = vrot.slane %v407_v1, 2  ;;  %v414_v4 = vrot.slane %v413_v2, 4 }
 0x358   : > { %v415_v7 = vadd.f32 %v414_v4, %v413_v2  ;;  %v409_v8 = vadd.f32 %v408_v3, %v407_v1 }
 0x35a   : > { %v416_v9 = vrot.slane %v415_v7, 2  ;;  %v410_v11 = vrot.slane %v409_v8, 1 }
 0x35c   : > { %v417_v10 = vadd.f32 %v416_v9, %v415_v7  ;;  %v411_v14 = vadd.f32 %v410_v11, %v409_v8 }
 0x35e   : > { %v418_v12 = vrot.slane %v417_v10, 1 }
 0x360   : > { %v419_v13 = vadd.f32 %v418_v12, %v417_v10 }
 0x362   : > { %1404 = vpush %v419_v13 }
 0x363   : > { %1406 = vpush %v411_v14 }
 0x393   : > { %s1405_s27 = spop %1404 }
 0x394   : > { %s1407_s17 = spop %1406 }
 0x395   : > { %s422_s18 = smul.f32 1e-10, %s1407_s17 }
 0x397   : > { %p423_p3 = scmp.le.f32.partialorder %s1405_s27, %s422_s18 }
 0x399   : > { %p425_p4 = por %p424_p2, %p423_p3 }
 0x39b   :  { %873 = sbr.rel (!%p425_p4) target bundleno = 251 (0xfb), region = 330 }
 0x3a0 PF:  { %v942_v15 = vld [vmem:[#allocation15] sm:$0xf]  ;;  %s874_s19 = smov [#allocation23]  ;;  %v878_v5 = vmov %v1610_v5  ;;  %v881_v6 = vmov %v1612_v6  ;;  %v934_v16 = vld [vmem:[#allocation12] sm:$0xf]  ;;  %s1544_s20 = smov [#allocation16]  }
 0x3a1   :  { %v898_v5 = vmov %v1610_v5  ;;  %v901_v6 = vmov %v1612_v6  ;;  %945 = vst [vmem:[#allocation16] sm:$0xf] %v942_v15  ;;  %s1102_s21 = sshll.u32 %s1544_s20, 4  ;;  %v882_v17 = vld [vmem:[%s874_s19] sm:$0xf]  ;;  %vm885_vm10 = vcmp.eq.s32.totalorder %v881_v6, %v878_v5  ;;  %s894_s26 = smov [#allocation26]  ;;  %s1103_s21 = int_to_ptr.vmem [resolvable:$true] %s1102_s21 }
 0x3a2   :  { %vm905_vm11 = vcmp.eq.s32.totalorder %v901_v6, %v898_v5  ;;  %937 = vst [vmem:[#allocation13] sm:$0xf] %v934_v16  ;;  %v950_v18 = vld [vmem:[#allocation18] sm:$0xf]  ;;  %v886_v19 = vsel %vm885_vm10, %v882_v17, 0.0  ;;  %s1439_s22 = scalar_lea.vmem %s1103_s21, 64  ;;  %p1444_p6 = scmp.lt.s32.totalorder %s1103_s21, %s1103_s21 }
 0x3a3   :  { %953 = vst [vmem:[#allocation19] sm:$0xf] %v950_v18  ;;  %v958_v20 = vld [vmem:[#allocation20] sm:$0xf]  ;;  %p1440_p5 = scmp.ne.s32.totalorder %s1103_s21, %s1439_s22  ;;  %p1445_p7 = scmp.lt.s32.totalorder %s1439_s22, %s1439_s22 }
 0x3a5   :  { %p1446_p8 = por %p1445_p7, %p1444_p6 }
 0x3a7   :  { %p1447_p9 = pnand %p1446_p8, %p1440_p5 }
 0x3a9   :  { %1450 = shalt.err (!%p1447_p9)
}
 0x3aa   :  { %1105 = dma.vmem_to_hbm [thread:$0]  %s1103_s21, 64, %s1836_s7, [#allocation17]   ;;  %v887_v21 = vrot.slane %v886_v19, 4  ;;  %v902_v22 = vld [vmem:[%s894_s26] sm:$0xf] }
 0x3ab   :  { %961 = vst [vmem:[#allocation21] sm:$0xf] %v958_v20  ;;  %v906_v23 = vsel %vm905_vm11, %v902_v22, 0.0  ;;  %s1545_s25 = smov [#allocation13]   ;;  %s1546_s29 = smov [#allocation19]  }
 0x3ac   :  { %v888_v24 = vadd.f32 %v887_v21, %v886_v19  ;;  %v907_v25 = vrot.slane %v906_v23, 4  ;;  %s1095_s28 = sshll.u32 %s1545_s25, 4  ;;  %s1109_s30 = sshll.u32 %s1546_s29, 4  ;;  %s1096_s28 = int_to_ptr.vmem [resolvable:$true] %s1095_s28  ;;  %s1110_s30 = int_to_ptr.vmem [resolvable:$true] %s1109_s30 }
 0x3ad   :  { %s1459_s10 = scalar_lea.vmem %s1096_s28, 64  ;;  %p1464_p11 = scmp.lt.s32.totalorder %s1096_s28, %s1096_s28 }
 0x3ae   :  { %v889_v26 = vrot.slane %v888_v24, 2  ;;  %v908_v27 = vadd.f32 %v907_v25, %v906_v23  ;;  %p1460_p10 = scmp.ne.s32.totalorder %s1096_s28, %s1459_s10  ;;  %p1465_p12 = scmp.lt.s32.totalorder %s1459_s10, %s1459_s10 }
 0x3b0   :  { %p1466_p13 = por %p1465_p12, %p1464_p11 }
 0x3b2   :  { %p1467_p0 = pnand %p1466_p13, %p1460_p10 }
 0x3b4   :  { %1470 = shalt.err (!%p1467_p0)
}
 0x3b5   :  { %1098 = dma.vmem_to_hbm [thread:$0]  %s1096_s28, 64, %s1835_s6, [#allocation14]   ;;  %v890_v5 = vadd.f32 %v889_v26, %v888_v24  ;;  %v909_v6 = vrot.slane %v908_v27, 2 }
 0x3b6   :  { %s1479_s12 = scalar_lea.vmem %s1110_s30, 64  ;;  %p1484_p2 = scmp.lt.s32.totalorder %s1110_s30, %s1110_s30 }
 0x3b7   :  { %p1480_p1 = scmp.ne.s32.totalorder %s1110_s30, %s1479_s12  ;;  %p1485_p3 = scmp.lt.s32.totalorder %s1479_s12, %s1479_s12 }
 0x3b9   :  { %p1486_p4 = por %p1485_p3, %p1484_p2 }
 0x3bb   :  { %p1487_p5 = pnand %p1486_p4, %p1480_p1 }
 0x3bd   :  { %1490 = shalt.err (!%p1487_p5)
}
 0x3be   :  { %1112 = dma.vmem_to_hbm [thread:$0]  %s1110_s30, 64, %s1837_s8, [#allocation17]   ;;  %v891_v28 = vrot.slane %v890_v5, 1  ;;  %v910_v29 = vadd.f32 %v909_v6, %v908_v27 }
 0x3bf   :  { %s1547_s15 = smov [#allocation21]   ;;  %s875_s0 = smov [#allocation8] }
 0x3c0   :  { %s1116_s16 = sshll.u32 %s1547_s15, 4  ;;  %s1117_s16 = int_to_ptr.vmem [resolvable:$true] %s1116_s16 }
 0x3c1   :  { %s1499_s6 = scalar_lea.vmem %s1117_s16, 64  ;;  %p1504_p7 = scmp.lt.s32.totalorder %s1117_s16, %s1117_s16 }
 0x3c2   :  { %p1500_p6 = scmp.ne.s32.totalorder %s1117_s16, %s1499_s6  ;;  %p1505_p8 = scmp.lt.s32.totalorder %s1499_s6, %s1499_s6 }
 0x3c4   :  { %p1506_p9 = por %p1505_p8, %p1504_p7 }
 0x3c6   :  { %p1507_p10 = pnand %p1506_p9, %p1500_p6 }
 0x3c8   :  { %1510 = shalt.err (!%p1507_p10)
}
 0x3c9   :  { %1119 = dma.vmem_to_hbm [thread:$0]  %s1117_s16, 64, %s1838_s9, [#allocation22]   ;;  %v892_v30 = vadd.f32 %v891_v28, %v890_v5  ;;  %v911_v31 = vrot.slane %v910_v29, 1 }
 0x3ca   :  { %s895_s8 = smov [#allocation10] }
 0x3cb   :  { %893 = vst [vmem:[%s875_s0] sm:$0x1] %v892_v30  ;;  %v912_v32 = vadd.f32 %v911_v31, %v910_v29 }
 0x3cd   :  { %913 = vst [vmem:[%s895_s8] sm:$0x1] %v912_v32 }
 0x3d2   :  { %v918_v33 = vld [vmem:[#allocation8] sm:$0x1] }
 0x3d3   :  { %921 = vst [vmem:[#allocation9] sm:$0x1] %v918_v33 }
 0x3d4   :  { %v926_v34 = vld [vmem:[#allocation10] sm:$0x1] }
 0x3d5   :  { %929 = vst [vmem:[#allocation11] sm:$0x1] %v926_v34 }
 0x3da   :  { %v1025_v35 = vld [vmem:[#allocation9] sm:$0x1] }
 0x3db   :  { %1026 = vst [vmem:[%s1833_s4] sm:$0x1] %v1025_v35 }
 0x3dc   :  { %v1090_v36 = vld [vmem:[#allocation11] sm:$0x1] }
 0x3dd   :  { %1091 = vst [vmem:[%s1834_s5] sm:$0x1] %v1090_v36 }
 0x3de   :  { %1527 = dma.done.wait [#allocation14], 64  }
 0x3df   :  { %1528 = vsyncadd [#allocation14], 4294967232 }
 0x3e0   :  { %1529 = dma.done.wait [#allocation17], 128  }
 0x3e1   :  { %1530 = vsyncadd [#allocation17], 4294967168 }
 0x3e2   :  { %1531 = dma.done.wait [#allocation22], 64  }
 0x3e3   :  { %1532 = vsyncadd [#allocation22], 4294967232 }
 0x3e4   :  { %1128 = vsyncpa [#allocation14], 1 }
 0x3e5   :  { %1129 = vsyncpa [#allocation17], 1 }
 0x3e6   :  { %1130 = vsyncpa [#allocation22], 1 }

// kernel: _vendi_forward.1
= control target key start
LH: loop header
LB: loop body
LE: loop exit
PB: predicated region body
PF: predicated region fallthrough
CT: control target
= control target key end

     0   :  { %vm17_vm0 = vcmask 130048   ;;  %v1706_v6 = vmov 0.0   ;;  %v33_v7 = vlaneseq  ;;  %vm1707_vm2 = vmmov 0   ;;  %s1950_s0 = inlined_call_operand.vmem [shape: f32[8,16], index: 0, kind: input, shape index: {}]   ;;  %s1951_s1 = inlined_call_operand.vmem [shape: f32[8,16], index: 1, kind: input, shape index: {}]   ;;  %s1952_s2 = inlined_call_operand.vmem [shape: f32[8,16], index: 2, kind: input, shape index: {}]   ;;  %s1953_s3 = inlined_call_operand.vmem [shape: f32[8,8], index: 3, kind: output, shape index: {}]  }
   0x1   :  { %v14_v0 = vld [vmem:[%s1950_s0] sm:$0xff]  ;;  %1604 = vmatprep.subr.mxu0 %v1706_v6  ;;  %1609 = vmatprep.subr.mxu1 %v1706_v6  ;;  %vm1544_vm9 = vcmask 64512  }
   0x2   :  { %v15_v1 = vld [vmem:[%s1951_s1] sm:$0xff]  ;;  %v18_v3 = vsel %vm17_vm0, %v14_v0, 0.0  ;;  %v1743_v8 = vand.u32 127, %v33_v7  ;;  %1606 = vmatprep.mubr.msk.f32.mxu0 %vm1707_vm2, %v1706_v6  ;;  %1611 = vmatprep.mubr.msk.f32.mxu1 %vm1707_vm2, %v1706_v6 }
   0x3   :  { %v16_v2 = vld [vmem:[%s1952_s2] sm:$0xff]  ;;  %19 = vadd.xlane.f32.xlu0 %v18_v3  ;;  %v23_v5 = vsel %vm17_vm0, %v15_v1, 0.0 }
   0x4   :  { %v28_v4 = vsel %vm17_vm0, %v16_v2, 0.0  ;;  %vm35_vm1 = vcmp.eq.s32.totalorder %v1743_v8, 15 }
   0x5   :  { %29 = vadd.xlane.f32.xlu1 %v28_v4  ;;  %v1567_v13 = vsel %vm35_vm1, 1.0, %v1706_v6 }
   0x7   :  { %24 = vadd.xlane.f32.xlu0 %v23_v5 }
  0x8c   :  { %v20_v9 = vpop.xlane.xlu0 %19 }
  0x8d   :  { %v21_v11 = vmul.f32 0.0625, %v20_v9 }
  0x8e   :  { %v30_v10 = vpop.xlane.xlu1 %29 }
  0x8f   :  { %v31_v12 = vmul.f32 0.0625, %v30_v10  ;;  %v1747_v14 = vsub.f32 %v14_v0, %v21_v11 }
  0x90   :  { %v25_v16 = vpop.xlane.xlu0 %24 }
  0x91   :  { %v1749_v15 = vsub.f32 %v16_v2, %v31_v12  ;;  %v26_v17 = vmul.f32 0.0625, %v25_v16  ;;  %v38_v18 = vmul.f32 %v1567_v13, %v1747_v14 }
  0x93   :  { %v46_v19 = vmul.f32 %v1567_v13, %v1749_v15  ;;  %v1753_v20 = vsub.f32 %v15_v1, %v26_v17  ;;  %v39_v21 = vsel %vm17_vm0, %v38_v18, 0.0 }
  0x94   :  { %40 = vadd.xlane.f32.xlu1 %v39_v21 }
  0x95   :  { %v42_v22 = vmul.f32 %v1567_v13, %v1753_v20  ;;  %v47_v23 = vsel %vm17_vm0, %v46_v19, 0.0 }
  0x97   :  { %v43_v24 = vsel %vm17_vm0, %v42_v22, 0.0 }
  0x98   :  { %44 = vadd.xlane.f32.xlu0 %v43_v24  ;;  %48 = vadd.xlane.f32.xlu1 %v47_v23 }
 0x11d   :  { %v41_v25 = vpop.xlane.xlu1 %40 }
 0x11e   :  { %v50_v28 = vmul.f32 %v41_v25, %v41_v25 }
 0x121   :  { %v45_v26 = vpop.xlane.xlu0 %44  ;;  %v49_v27 = vpop.xlane.xlu1 %48 }
 0x122   :  { %v51_v29 = vmul.f32 %v45_v26, %v45_v26  ;;  %v53_v30 = vmul.f32 %v49_v27, %v49_v27 }
 0x124   :  { %v52_v31 = vadd.f32 %v51_v29, %v50_v28 }
 0x126   :  { %v1763_v32 = vadd.f32 %v53_v30, %v52_v31 }
 0x128   :  { %v55_v33 = vmax.f32 %v1763_v32, 1e-30  ;;  %vm89_vm6 = vcmp.gt.f32.partialorder %v1763_v32, 1e-24 }
 0x12a   :  { %1696 = vrsqrt.f32 %v55_v33 }
 0x137   :  { %v1697_v34 = vpop.eup %1696 }
 0x138   :  { %v1766_v35 = vmul.f32 %v1697_v34, %v41_v25  ;;  %v1768_v36 = vmul.f32 %v1697_v34, %v45_v26  ;;  %v1770_v37 = vmul.f32 %v1697_v34, %v49_v27 }
 0x13a   :  { %v1774_v38 = vmul.f32 %v1768_v36, %v1768_v36  ;;  %v1778_v39 = vmul.f32 %v1770_v37, %v1770_v37  ;;  %v73_v40 = vmul.f32 %v1766_v35, %v1766_v35  ;;  %v75_v41 = vsub.f32 0.0, %v1766_v35 }
 0x13b   :  { %v88_v55 = vsub.f32 0.0, %v1770_v37  ;;  %v103_v58 = vmul.f32 %v1768_v36, %v1766_v35  ;;  %v118_v59 = vmul.f32 %v1770_v37, %v1766_v35  ;;  %v127_v60 = vmul.f32 0.0, %v1768_v36 }
 0x13c   :  { %v1785_v42 = vadd.f32 %v1778_v39, %v1774_v38  ;;  %v74_v43 = vsub.f32 1.0, %v73_v40  ;;  %v76_v44 = vmul.f32 %v75_v41, %v1768_v36  ;;  %v77_v45 = vmul.f32 %v75_v41, %v1770_v37 }
 0x13d   :  { %v112_v63 = vmul.f32 0.0, %v88_v55  ;;  %v146_v0 = vmul.f32 %v88_v55, %v88_v55  ;;  %v152_v1 = vmul.f32 %v1770_v37, %v1768_v36 }
 0x13e   :  { %1698 = vrsqrt.f32 %v1785_v42  ;;  %v78_v46 = vmul.f32 %v74_v43, %v74_v43  ;;  %v79_v47 = vmul.f32 %v76_v44, %v76_v44  ;;  %v81_v49 = vmul.f32 %v77_v45, %v77_v45 }
 0x13f   :  { %v70_v50 = vmax.f32 %v1785_v42, 1e-30  ;;  %vm65_vm3 = vcmp.eq.f32.partialorder %v1785_v42, inf  ;;  %v68_v62 = vand.u32 2147483648, %v1785_v42  ;;  %vm67_vm4 = vcmp.eq.f32.partialorder %v1785_v42, 0.0 }
 0x140   :  { %v80_v48 = vadd.f32 %v79_v47, %v78_v46  ;;  %vm90_vm5 = vcmp.gt.f32.partialorder %v1785_v42, 1e-12 }
 0x141   :  { %1700 = vrcp.f32 %v70_v50  ;;  %vm1839_vm7 = vmand %vm89_vm6, %vm90_vm5 }
 0x142   :  { %v82_v51 = vadd.f32 %v81_v49, %v80_v48 }
 0x144   :  { %v83_v52 = vmax.f32 %v82_v51, 1e-30 }
 0x146   :  { %1702 = vrsqrt.f32 %v83_v52 }
 0x14b   :  { %v1699_v53 = vpop.eup %1698 }
 0x14c   :  { %v64_v54 = vmul.f32 %v1699_v53, %v1785_v42 }
 0x14e   :  { %v1794_v56 = vpop.eup %1700  ;;  %v66_v57 = vsel %vm65_vm3, %v1785_v42, %v64_v54 }
 0x14f   :  { %v1808_v5 = vsel %vm67_vm4, %v68_v62, %v66_v57  ;;  %v99_v9 = vmul.f32 0.0, %v1794_v56  ;;  %v113_v10 = vmul.f32 %v1794_v56, %v112_v63  ;;  %v161_v63 = vmul.f32 %v88_v55, %v1768_v36 }
 0x153   :  { %v1703_v61 = vpop.eup %1702 }
 0x154   :  { %v85_v2 = vmul.f32 %v1703_v61, %v74_v43  ;;  %v86_v3 = vmul.f32 %v1703_v61, %v76_v44  ;;  %v1806_v4 = vmul.f32 %v1703_v61, %v77_v45 }
 0x156   :  { %v92_v11 = vmul.f32 %v85_v2, %v85_v2  ;;  %v95_v12 = vmul.f32 %v85_v2, %v1766_v35  ;;  %v104_v13 = vmul.f32 %v86_v3, %v85_v2  ;;  %v107_v16 = vmul.f32 %v85_v2, %v1768_v36 }
 0x157   :  { %v108_v17 = vmul.f32 %v86_v3, %v1766_v35  ;;  %v119_v18 = vmul.f32 %v1806_v4, %v85_v2  ;;  %v122_v19 = vmul.f32 %v85_v2, %v1770_v37  ;;  %v123_v21 = vmul.f32 %v1806_v4, %v1766_v35 }
 0x158   :  { %v93_v22 = vadd.f32 %v92_v11, %v73_v40  ;;  %v96_v23 = vsub.f32 %v95_v12, %v95_v12  ;;  %v105_v24 = vadd.f32 %v104_v13, %v103_v58  ;;  %v139_v25 = vmul.f32 %v86_v3, %v86_v3 }
 0x159   :  { %v109_v26 = vsub.f32 %v107_v16, %v108_v17  ;;  %v120_v27 = vadd.f32 %v119_v18, %v118_v59  ;;  %v124_v28 = vsub.f32 %v122_v19, %v123_v21  ;;  %v133_v29 = vsub.f32 %v108_v17, %v107_v16 }
 0x15a   :  { %v94_v30 = vmul.f32 %v93_v22, %v1766_v35  ;;  %v97_v31 = vmul.f32 %v96_v23, %v1808_v5  ;;  %v106_v33 = vmul.f32 %v105_v24, %v1766_v35  ;;  %v140_v34 = vadd.f32 %v139_v25, %v1774_v38 }
 0x15b   :  { %v110_v41 = vmul.f32 %v109_v26, %v1808_v5  ;;  %v121_v43 = vmul.f32 %v120_v27, %v1766_v35  ;;  %v125_v40 = vmul.f32 %v124_v28, %v1808_v5  ;;  %v134_v44 = vmul.f32 %v133_v29, %v1808_v5 }
 0x15c   :  { %v98_v45 = vadd.f32 %v97_v31, %v94_v30  ;;  %v141_v46 = vmul.f32 %v140_v34, %v1766_v35  ;;  %v142_v47 = vmul.f32 %v86_v3, %v1768_v36  ;;  %v153_v48 = vmul.f32 %v1806_v4, %v86_v3 }
 0x15d   :  { %v111_v49 = vadd.f32 %v110_v41, %v106_v33  ;;  %v126_v50 = vadd.f32 %v125_v40, %v121_v43  ;;  %v135_v51 = vadd.f32 %v134_v44, %v106_v33  ;;  %v156_v52 = vmul.f32 %v86_v3, %v1770_v37 }
 0x15e   :  { %v100_v53 = vadd.f32 %v99_v9, %v98_v45  ;;  %v143_v54 = vsub.f32 %v142_v47, %v142_v47  ;;  %v154_v57 = vadd.f32 %v153_v48, %v152_v1  ;;  %v157_v58 = vmul.f32 %v1806_v4, %v1768_v36 }
 0x15f   :  { %v114_v61 = vadd.f32 %v113_v10, %v111_v49  ;;  %v136_v62 = vadd.f32 %v135_v51, %v113_v10  ;;  %v167_v2 = vsub.f32 %v123_v21, %v122_v19  ;;  %v128_v1 = vmul.f32 %v1794_v56, %v127_v60 }
 0x160   :  { %v101_v3 = vsel %vm1839_vm7, %v100_v53, 1.0  ;;  %v144_v9 = vmul.f32 %v143_v54, %v1808_v5  ;;  %v158_v11 = vsub.f32 %v156_v52, %v157_v58  ;;  %v147_v12 = vmul.f32 %v1794_v56, %v146_v0 }
 0x161   :  { %v115_v32 = vsel %vm1839_vm7, %v114_v61, 0.0  ;;  %v137_v42 = vsel %vm1839_vm7, %v136_v62, 0.0  ;;  %v155_v10 = vmul.f32 %v154_v57, %v1766_v35  ;;  %v102_v36 = vmul.f32 %v101_v3, %v1747_v14 }
 0x162   :  { %v129_v55 = vadd.f32 %v128_v1, %v126_v50  ;;  %v145_v13 = vadd.f32 %v144_v9, %v141_v46  ;;  %v162_v16 = vmul.f32 %v1794_v56, %v161_v63  ;;  %v159_v60 = vmul.f32 %v158_v11, %v1808_v5 }
 0x163   :  { %v168_v17 = vmul.f32 %v167_v2, %v1808_v5  ;;  %v173_v18 = vsub.f32 %v157_v58, %v156_v52  ;;  %v180_v19 = vmul.f32 %v1806_v4, %v1806_v4  ;;  %v116_v21 = vmul.f32 %v115_v32, %v1753_v20 }
 0x164   :  { %v138_v0 = vmul.f32 %v137_v42, %v1747_v14  ;;  %v148_v22 = vadd.f32 %v147_v12, %v145_v13  ;;  %v183_v23 = vmul.f32 %v1806_v4, %v1770_v37  ;;  %v160_v24 = vadd.f32 %v159_v60, %v155_v10 }
 0x165   :  { %v169_v25 = vadd.f32 %v168_v17, %v121_v43  ;;  %v174_v26 = vmul.f32 %v173_v18, %v1808_v5  ;;  %v181_v27 = vadd.f32 %v180_v19, %v1778_v39  ;;  %v130_v30 = vsel %vm1839_vm7, %v129_v55, 0.0 }
 0x166   :  { %v149_v28 = vsel %vm1839_vm7, %v148_v22, 1.0  ;;  %v184_v29 = vsub.f32 %v183_v23, %v183_v23  ;;  %v163_v33 = vadd.f32 %v162_v16, %v160_v24  ;;  %v117_v41 = vadd.f32 %v116_v21, %v102_v36 }
 0x167   :  { %v150_v31 = vmul.f32 %v149_v28, %v1753_v20  ;;  %v175_v34 = vadd.f32 %v174_v26, %v155_v10  ;;  %v182_v37 = vmul.f32 %v181_v27, %v1766_v35  ;;  %v170_v40 = vadd.f32 %v169_v25, %v128_v1 }
 0x168   :  { %v185_v4 = vmul.f32 %v184_v29, %v1808_v5  ;;  %v164_v39 = vsel %vm1839_vm7, %v163_v33, 0.0  ;;  %v131_v45 = vmul.f32 %v130_v30, %v1749_v15  ;;  %v187_v5 = vmul.f32 %v1794_v56, %v1774_v38 }
 0x169   :  { %v151_v43 = vadd.f32 %v150_v31, %v138_v0  ;;  %v176_v44 = vadd.f32 %v175_v34, %v162_v16  ;;  %v165_v46 = vmul.f32 %v164_v39, %v1749_v15  ;;  %v171_v50 = vsel %vm1839_vm7, %v170_v40, 0.0 }
 0x16a   :  { %v186_v47 = vadd.f32 %v185_v4, %v182_v37  ;;  %v132_v49 = vadd.f32 %v131_v45, %v117_v41  ;;  %v172_v54 = vmul.f32 %v171_v50, %v1747_v14 }
 0x16b   :  { %v166_v48 = vadd.f32 %v165_v46, %v151_v43  ;;  %v177_v35 = vsel %vm1839_vm7, %v176_v44, 0.0 }
 0x16c   :  { %v188_v52 = vadd.f32 %v187_v5, %v186_v47  ;;  %v178_v57 = vmul.f32 %v177_v35, %v1753_v20  ;;  %v642_v58 = vsel %vm17_vm0, %v132_v49, 0 }
 0x16d   :  { %v193_v51 = vsel %vm17_vm0, %v166_v48, 0  ;;  %v675_v2 = vand.u32 4294901760, %v642_v58 }
 0x16e   :  { %v226_v53 = vand.u32 4294901760, %v193_v51  ;;  %v189_v62 = vsel %vm1839_vm7, %v188_v52, 1.0  ;;  %v179_v38 = vadd.f32 %v178_v57, %v172_v54 }
 0x16f   :  { %v190_v3 = vmul.f32 %v189_v62, %v1749_v15  ;;  %v711_v9 = vsub.f32 %v642_v58, %v675_v2 }
 0x170   :  { %1605 = vmatpush3.xpose.msra.mxu0 %v226_v53  ;;  %v262_v61 = vsub.f32 %v193_v51, %v226_v53 }
 0x171   :  { %1614 = vmatprep.subr.mxu0 %v1706_v6  ;;  %v191_v14 = vadd.f32 %v190_v3, %v179_v38  ;;  %v712_v20 = vand.u32 4294901760, %v711_v9 }
 0x172   :  { %v263_v63 = vand.u32 4294901760, %v262_v61 }
 0x173   :  { %v1091_v59 = vsel %vm17_vm0, %v191_v14, 0  ;;  %v713_v15 = vsub.f32 %v711_v9, %v712_v20 }
 0x174   :  { %v264_v56 = vsub.f32 %v262_v61, %v263_v63  ;;  %v1124_v11 = vand.u32 4294901760, %v1091_v59 }
 0x175   :  { %v714_v32 = vand.u32 4294901760, %v713_v15 }
 0x176   :  { %v265_v1 = vand.u32 4294901760, %v264_v56  ;;  %v1160_v42 = vsub.f32 %v1091_v59, %v1124_v11 }
 0x178   :  { %1607 = vmatmul.mubr.f32.vlgmr.msra.gmra.mxu0 %v265_v1  ;;  %1610 = vmatpush3.xpose.msra.mxu1 %v265_v1  ;;  %v1161_v12 = vand.u32 4294901760, %v1160_v42 }
 0x179   :  { %1615 = vmatpush3.xpose.msra.mxu0 %v262_v61  ;;  %1616 = vmatprep.mubr.msk.f32.mxu0 %vm1707_vm2, %v1706_v6 }
 0x17a   :  { %1619 = vmatprep.subr.mxu1 %v1706_v6  ;;  %1624 = vmatprep.subr.mxu0 %v1706_v6  ;;  %v1162_v10 = vsub.f32 %v1160_v42, %v1161_v12 }
 0x17b   :  { %1612 = vmatmul.mubr.f32.vlgmr.msra.gmra.mxu1 %v226_v53 }
 0x17c   :  { %1617 = vmatmul.mubr.f32.vlgmr.msra.gmra.mxu0 %v262_v61  ;;  %1620 = vmatpush3.xpose.msra.mxu1 %v226_v53  ;;  %v1163_v36 = vand.u32 4294901760, %v1162_v10 }
 0x17d   :  { %1625 = vmatpush3.xpose.msra.mxu0 %v263_v63  ;;  %1621 = vmatprep.mubr.msk.f32.mxu1 %vm1707_vm2, %v1706_v6 }
 0x17e   :  { %1626 = vmatprep.mubr.msk.f32.mxu0 %vm1707_vm2, %v1706_v6  ;;  %1629 = vmatprep.subr.mxu1 %v1706_v6 }
 0x17f   :  { %1622 = vmatmul.mubr.f32.vlgmr.msra.gmra.mxu1 %v263_v63  ;;  %1634 = vmatprep.subr.mxu0 %v1706_v6 }
 0x180   :  { %1627 = vmatmul.mubr.f32.vlgmr.msra.gmra.mxu0 %v226_v53  ;;  %1630 = vmatpush3.xpose.msra.mxu1 %v226_v53 }
 0x181   :  { %1635 = vmatpush3.xpose.msra.mxu0 %v675_v2  ;;  %1631 = vmatprep.mubr.msk.f32.mxu1 %vm1707_vm2, %v1706_v6 }
 0x182   :  { %1636 = vmatprep.mubr.msk.f32.mxu0 %vm1707_vm2, %v1706_v6  ;;  %1639 = vmatprep.subr.mxu1 %v1706_v6 }
 0x183   :  { %1632 = vmatmul.mubr.f32.vlgmr.msra.gmra.mxu1 %v226_v53  ;;  %1644 = vmatprep.subr.mxu0 %v1706_v6 }
 0x184   :  { %1637 = vmatmul.mubr.f32.vlgmr.msra.gmra.mxu0 %v714_v32  ;;  %1640 = vmatpush3.xpose.msra.mxu1 %v714_v32 }
 0x185   :  { %1645 = vmatpush3.xpose.msra.mxu0 %v711_v9  ;;  %1641 = vmatprep.mubr.msk.f32.mxu1 %vm1707_vm2, %v1706_v6 }
 0x186   :  { %1646 = vmatprep.mubr.msk.f32.mxu0 %vm1707_vm2, %v1706_v6  ;;  %1649 = vmatprep.subr.mxu1 %v1706_v6 }
 0x187   :  { %1642 = vmatmul.mubr.f32.vlgmr.msra.gmra.mxu1 %v675_v2  ;;  %1654 = vmatprep.subr.mxu0 %v1706_v6 }
 0x188   :  { %1647 = vmatmul.mubr.f32.vlgmr.msra.gmra.mxu0 %v711_v9  ;;  %1650 = vmatpush3.xpose.msra.mxu1 %v675_v2 }
 0x189   :  { %1655 = vmatpush3.xpose.msra.mxu0 %v712_v20  ;;  %1651 = vmatprep.mubr.msk.f32.mxu1 %vm1707_vm2, %v1706_v6 }
 0x18a   :  { %1656 = vmatprep.mubr.msk.f32.mxu0 %vm1707_vm2, %v1706_v6  ;;  %1659 = vmatprep.subr.mxu1 %v1706_v6 }
 0x18b   :  { %1652 = vmatmul.mubr.f32.vlgmr.msra.gmra.mxu1 %v712_v20  ;;  %1664 = vmatprep.subr.mxu0 %v1706_v6 }
 0x18c   :  { %1657 = vmatmul.mubr.f32.vlgmr.msra.gmra.mxu0 %v675_v2  ;;  %1660 = vmatpush3.xpose.msra.mxu1 %v675_v2 }
 0x18d   :  { %1665 = vmatpush3.xpose.msra.mxu0 %v1124_v11  ;;  %1661 = vmatprep.mubr.msk.f32.mxu1 %vm1707_vm2, %v1706_v6 }
 0x18e   :  { %1666 = vmatprep.mubr.msk.f32.mxu0 %vm1707_vm2, %v1706_v6  ;;  %1669 = vmatprep.subr.mxu1 %v1706_v6 }
 0x18f   :  { %1662 = vmatmul.mubr.f32.vlgmr.msra.gmra.mxu1 %v675_v2  ;;  %1674 = vmatprep.subr.mxu0 %v1706_v6  ;;  %v1541_v2 = vshrl.u32 %v33_v7, 7 }
 0x190   :  { %1667 = vmatmul.mubr.f32.vlgmr.msra.gmra.mxu0 %v1163_v36  ;;  %1670 = vmatpush3.xpose.msra.mxu1 %v1163_v36 }
 0x191   :  { %1675 = vmatpush3.xpose.msra.mxu0 %v1160_v42  ;;  %1671 = vmatprep.mubr.msk.f32.mxu1 %vm1707_vm2, %v1706_v6  ;;  %vm1542_vm8 = vcmp.eq.s32.totalorder %v1541_v2, %v1743_v8 }
 0x192   :  { %1676 = vmatprep.mubr.msk.f32.mxu0 %vm1707_vm2, %v1706_v6  ;;  %1679 = vmatprep.subr.mxu1 %v1706_v6 }
 0x193   :  { %1672 = vmatmul.mubr.f32.vlgmr.msra.gmra.mxu1 %v1124_v11  ;;  %1684 = vmatprep.subr.mxu0 %v1706_v6 }
 0x194   :  { %1677 = vmatmul.mubr.f32.vlgmr.msra.gmra.mxu0 %v1160_v42  ;;  %1680 = vmatpush3.xpose.msra.mxu1 %v1124_v11 }
 0x195   :  { %1685 = vmatpush3.xpose.msra.mxu0 %v1161_v12  ;;  %1681 = vmatprep.mubr.msk.f32.mxu1 %vm1707_vm2, %v1706_v6 }
 0x196   :  { %1686 = vmatprep.mubr.msk.f32.mxu0 %vm1707_vm2, %v1706_v6  ;;  %1689 = vmatprep.subr.mxu1 %v1706_v6 }
 0x197   :  { %1682 = vmatmul.mubr.f32.vlgmr.msra.gmra.mxu1 %v1161_v12 }
 0x198   :  { %1687 = vmatmul.mubr.f32.vlgmr.msra.gmra.mxu0 %v1124_v11  ;;  %1690 = vmatpush3.xpose.msra.mxu1 %v1124_v11 }
 0x199   :  { %1691 = vmatprep.mubr.msk.f32.mxu1 %vm1707_vm2, %v1706_v6 }
 0x19b   :  { %1692 = vmatmul.mubr.f32.vlgmr.msra.gmra.mxu1 %v1124_v11 }
 0x238   :  { %v267_v55 = vpop.f32.mrf.mxu0 }
 0x23a   :  { %v1608_v13 = vpop.f32.mrf.mxu0 }
 0x23b   :  { %v343_v16 = vpop.f32.mrf.mxu1 }
 0x23c   :  { %v344_v60 = vadd.f32 %v343_v16, %v267_v55  ;;  %v417_v17 = vpop.f32.mrf.mxu0 }
 0x23d   :  { %v1613_v18 = vpop.f32.mrf.mxu1 }
 0x23e   :  { %v418_v19 = vadd.f32 %v417_v17, %v344_v60  ;;  %v1618_v21 = vpop.f32.mrf.mxu0 }
 0x23f   :  { %v491_v0 = vpop.f32.mrf.mxu1 }
 0x240   :  { %v492_v22 = vadd.f32 %v491_v0, %v418_v19  ;;  %v565_v23 = vpop.f32.mrf.mxu0 }
 0x241   :  { %v1623_v24 = vpop.f32.mrf.mxu1 }
 0x242   :  { %v566_v25 = vadd.f32 %v565_v23, %v492_v22  ;;  %v1628_v26 = vpop.f32.mrf.mxu0 }
 0x243   :  { %v637_v27 = vpop.f32.mrf.mxu1 }
 0x244   :  { %v638_v28 = vadd.f32 %v637_v27, %v566_v25  ;;  %v716_v29 = vpop.f32.mrf.mxu0 }
 0x245   :  { %v1633_v30 = vpop.f32.mrf.mxu1 }
 0x246   :  { %v1638_v6 = vpop.f32.mrf.mxu0  ;;  %v717_v33 = vadd.f32 %v716_v29, %v638_v28 }
 0x247   :  { %v792_v31 = vpop.f32.mrf.mxu1 }
 0x248   :  { %v866_v34 = vpop.f32.mrf.mxu0  ;;  %v793_v43 = vadd.f32 %v792_v31, %v717_v33 }
 0x249   :  { %v1643_v41 = vpop.f32.mrf.mxu1 }
 0x24a   :  { %v1648_v37 = vpop.f32.mrf.mxu0  ;;  %v867_v46 = vadd.f32 %v866_v34, %v793_v43 }
 0x24b   :  { %v940_v4 = vpop.f32.mrf.mxu1 }
 0x24c   :  { %v1014_v39 = vpop.f32.mrf.mxu0  ;;  %v941_v35 = vadd.f32 %v940_v4, %v867_v46 }
 0x24d   :  { %v1653_v40 = vpop.f32.mrf.mxu1 }
 0x24e   :  { %v1658_v44 = vpop.f32.mrf.mxu0  ;;  %v1015_v58 = vadd.f32 %v1014_v39, %v941_v35 }
 0x24f   :  { %v1086_v45 = vpop.f32.mrf.mxu1 }
 0x250   :  { %v1165_v47 = vpop.f32.mrf.mxu0  ;;  %v1087_v1 = vadd.f32 %v1086_v45, %v1015_v58 }
 0x251   :  { %v1663_v48 = vpop.f32.mrf.mxu1 }
 0x252   :  { %v1668_v49 = vpop.f32.mrf.mxu0 }
 0x253   :  { %v1241_v50 = vpop.f32.mrf.mxu1 }
 0x254   :  { %v1242_v5 = vadd.f32 %v1241_v50, %v1165_v47  ;;  %v1315_v51 = vpop.f32.mrf.mxu0 }
 0x255   :  { %v1673_v52 = vpop.f32.mrf.mxu1 }
 0x256   :  { %v1316_v53 = vadd.f32 %v1315_v51, %v1242_v5  ;;  %v1678_v54 = vpop.f32.mrf.mxu0 }
 0x257   :  { %v1389_v57 = vpop.f32.mrf.mxu1 }
 0x258   :  { %v1390_v61 = vadd.f32 %v1389_v57, %v1316_v53  ;;  %v1463_v62 = vpop.f32.mrf.mxu0 }
 0x259   :  { %v1683_v63 = vpop.f32.mrf.mxu1 }
 0x25a   :  { %v1464_v38 = vadd.f32 %v1463_v62, %v1390_v61  ;;  %v1688_v56 = vpop.f32.mrf.mxu0 }
 0x25b   :  { %v1535_v3 = vpop.f32.mrf.mxu1 }
 0x25c   :  { %v1536_v9 = vadd.f32 %v1535_v3, %v1464_v38 }
 0x25d   :  { %v1693_v14 = vpop.f32.mrf.mxu1 }
 0x25e   :  { %v1539_v20 = vadd.f32 %v1536_v9, %v1087_v1 }
 0x260   :  { %v1543_v59 = vsel %vm1542_vm8, %v1539_v20, 0.0  ;;  %v1555_v55 = vmul.f32 2.0, %v1539_v20 }
 0x261   :  { %v1545_v15 = vsel %vm1544_vm9, %v1543_v59, 0.0 }
 0x262   :  { %1546 = vadd.xlane.f32.xlu0 %v1545_v15  ;;  %v1548_v11 = vrot.slane %v1545_v15, 4 }
 0x264   :  { %v1549_v32 = vadd.f32 %v1548_v11, %v1545_v15 }
 0x266   :  { %v1550_v42 = vrot.slane %v1549_v32, 2 }
 0x268   :  { %v1551_v7 = vadd.f32 %v1550_v42, %v1549_v32 }
 0x26a   :  { %v1552_v12 = vrot.slane %v1551_v7, 1 }
 0x26c   :  { %v1553_v10 = vadd.f32 %v1552_v12, %v1551_v7 }
 0x2eb   :  { %v1547_v36 = vpop.xlane.xlu0 %1546 }
 0x2ec   :  { %v1554_v13 = vadd.f32 %v1553_v10, %v1547_v36 }
 0x2ee   :  { %v1556_v16 = vsub.f32 %v1554_v13, %v1555_v55 }
 0x2f0   :  { %v1557_v60 = vmax.f32 %v1556_v16, 0.0 }
 0x2f2   :  { %v1558_v17 = vmul.f32 -1.0, %v1557_v60 }
 0x2f4   :  { %v1559_v18 = vmul.f32 1.442695, %v1558_v17 }
 0x2f6   :  { %1704 = vpow2.f32 %v1559_v18 }
 0x303   :  { %v1705_v19 = vpop.eup %1704 }
 0x304   :  { %v1561_v21 = vsel %vm1542_vm8, 1.0, %v1705_v19 }
 0x305   :  { %1562 = vst.msk [vmem:[%s1953_s3] sm:$0xff] %vm1544_vm9, %v1561_v21 }

</bundles_post_ra>
